<compile_context>
chip_gen: v7x
topology: tpu7x:2x2x1
jax: 0.10.0
libtpu: 0.0.40
codegen_flags: <defaults>
</compile_context>

<pallas_src>
import functools

import numpy as np
import jax
import jax.numpy as jnp
from jax import lax
from jax.experimental import pallas as pl
from jax.experimental.pallas import tpu as pltpu

TARGET_IMAGE_SIZE = 64
LATENT_DIM = 28
BN_EPS = 1e-5

RESNET34_LAYERS = [(64, 64, 3), (64, 128, 4), (128, 256, 6), (256, 512, 3)]
DECODER_CHANNELS = [(512, 256), (256, 128), (128, 64), (64, 32), (32, 3)]


def _round_up(x, m):
    return (x + m - 1) // m * m


def _pad_c(c):
    return 8 if c <= 8 else _round_up(c, 128)


def _vmem_limit_bytes():
    # v7x: 64 MiB physical VMEM per TensorCore; v5e / v6e: 128 MiB.
    try:
        kind = jax.devices()[0].device_kind.lower()
    except Exception:
        kind = ""
    if "v7" in kind:
        return 48 * 1024 * 1024
    return 96 * 1024 * 1024


VMEM_LIMIT = _vmem_limit_bytes()


def _cparams(parallel=True):
    return pltpu.CompilerParams(
        dimension_semantics=("parallel",) if parallel else ("arbitrary",),
        vmem_limit_bytes=VMEM_LIMIT)


# --------------------------------------------------------------------------
# Kernel helpers
# --------------------------------------------------------------------------
def _act(x, act):
    if act == "relu":
        return jnp.maximum(x, 0.0)
    if act == "tanh":
        return jnp.tanh(x)
    return x


def _tap_accumulate(x_read, w_read, kd, kb):
    """sum_t dot(x_read(a, b), w_read(t)) over the kd*kb taps (f32 accumulate)."""
    acc = None
    for a in range(kd):
        for b in range(kb):
            d = jnp.dot(x_read(a, b), w_read(a * kb + b),
                        preferred_element_type=jnp.float32)
            acc = d if acc is None else acc + d
    return acc


# --------------------------------------------------------------------------
# Generic tap-loop conv kernel (stride-1 over an already haloed / parity input)
# --------------------------------------------------------------------------
def _conv_kernel(x_ref, w_ref, b_ref, o_ref, *, kd, kb, ho, wo, act, halo):
    cin = x_ref.shape[-1]
    n = o_ref.shape[-1]

    def x_read(a, b):
        return x_ref[0, pl.ds(a, ho), pl.ds(b, wo), :].reshape(ho * wo, cin)

    acc = _tap_accumulate(x_read, lambda t: w_ref[t], kd, kb) + b_ref[...]
    res = _act(acc, act).reshape(ho, wo, n).astype(o_ref.dtype)
    if halo:
        o_ref[...] = jnp.zeros(o_ref.shape, o_ref.dtype)
        o_ref[0, pl.ds(1, ho), pl.ds(1, wo), :] = res
    else:
        o_ref[0] = res


def conv_call(x, w, b, *, kd, kb, ho, wo, act, halo, out_dtype=jnp.bfloat16):
    bsz = x.shape[0]
    n = w.shape[-1]
    hp, wp = (ho + 2, wo + 2) if halo else (ho, wo)
    kern = functools.partial(_conv_kernel, kd=kd, kb=kb, ho=ho, wo=wo,
                             act=act, halo=halo)
    return pl.pallas_call(
        kern,
        grid=(bsz,),
        in_specs=[
            pl.BlockSpec((1,) + x.shape[1:], lambda i: (i, 0, 0, 0)),
            pl.BlockSpec(w.shape, lambda i: (0, 0, 0)),
            pl.BlockSpec(b.shape, lambda i: (0, 0)),
        ],
        out_specs=pl.BlockSpec((1, hp, wp, n), lambda i: (i, 0, 0, 0)),
        out_shape=jax.ShapeDtypeStruct((bsz, hp, wp, n), out_dtype),
        compiler_params=_cparams(),
    )(x, w, b)


# --------------------------------------------------------------------------
# Fused stack of stride-1 BasicBlocks (conv-relu-conv+residual-relu), weights
# stacked over blocks; the intermediate lives in VMEM scratch.
# --------------------------------------------------------------------------
def _resblocks_kernel(x_ref, w1_ref, b1_ref, w2_ref, b2_ref, o_ref,
                      cur_ref, mid_ref, *, nb, ho, wo, halo):
    c = cur_ref.shape[-1]
    mid_ref[...] = jnp.zeros(mid_ref.shape, mid_ref.dtype)
    cur_ref[...] = x_ref[0]

    def rd(ref):
        return lambda a, b: ref[pl.ds(a, ho), pl.ds(b, wo), :].reshape(ho * wo, c)

    for i in range(nb):
        m = _tap_accumulate(rd(cur_ref), lambda t: w1_ref[i, t], 3, 3) + b1_ref[i]
        m = jnp.maximum(m, 0.0)
        mid_ref[pl.ds(1, ho), pl.ds(1, wo), :] = (
            m.reshape(ho, wo, c).astype(mid_ref.dtype))
        idn = cur_ref[pl.ds(1, ho), pl.ds(1, wo), :].reshape(ho * wo, c)
        idn = idn.astype(jnp.float32)
        y = _tap_accumulate(rd(mid_ref), lambda t: w2_ref[i, t], 3, 3) + b2_ref[i]
        y = jnp.maximum(y + idn, 0.0)
        cur_ref[pl.ds(1, ho), pl.ds(1, wo), :] = (
            y.reshape(ho, wo, c).astype(cur_ref.dtype))

    if halo:
        o_ref[0] = cur_ref[...].astype(o_ref.dtype)
    else:
        o_ref[0] = cur_ref[pl.ds(1, ho), pl.ds(1, wo), :].astype(o_ref.dtype)


def resblocks_call(x, w1, b1, w2, b2, *, ho, wo, halo, out_dtype=jnp.bfloat16):
    bsz, _, _, c = x.shape
    nb = w1.shape[0]
    hp, wp = (ho + 2, wo + 2) if halo else (ho, wo)
    kern = functools.partial(_resblocks_kernel, nb=nb, ho=ho, wo=wo, halo=halo)
    return pl.pallas_call(
        kern,
        grid=(bsz,),
        in_specs=[
            pl.BlockSpec((1, ho + 2, wo + 2, c), lambda i: (i, 0, 0, 0)),
            pl.BlockSpec(w1.shape, lambda i: (0, 0, 0, 0)),
            pl.BlockSpec(b1.shape, lambda i: (0, 0, 0)),
            pl.BlockSpec(w2.shape, lambda i: (0, 0, 0, 0)),
            pl.BlockSpec(b2.shape, lambda i: (0, 0, 0)),
        ],
        out_specs=pl.BlockSpec((1, hp, wp, c), lambda i: (i, 0, 0, 0)),
        out_shape=jax.ShapeDtypeStruct((bsz, hp, wp, c), out_dtype),
        scratch_shapes=[pltpu.VMEM((ho + 2, wo + 2, c), jnp.bfloat16),
                        pltpu.VMEM((ho + 2, wo + 2, c), jnp.bfloat16)],
        compiler_params=_cparams(),
    )(x, w1, b1, w2, b2)


# --------------------------------------------------------------------------
# Fused stride-2 BasicBlock (parity-conv1 + conv2 + 1x1 downsample + residual)
# --------------------------------------------------------------------------
def _resblock_s2_kernel(x_ref, w1_ref, b1_ref, w2_ref, b2_ref, wd_ref, bd_ref,
                        o_ref, mid_ref, *, ho, wo, cin_p, halo):
    c4 = x_ref.shape[-1]
    cmid = mid_ref.shape[-1]
    mid_ref[...] = jnp.zeros(mid_ref.shape, mid_ref.dtype)

    def rd_x(a, b):
        return x_ref[0, pl.ds(a, ho), pl.ds(b, wo), :].reshape(ho * wo, c4)

    m = _tap_accumulate(rd_x, lambda t: w1_ref[t], 2, 2) + b1_ref[...]
    m = jnp.maximum(m, 0.0)
    mid_ref[pl.ds(1, ho), pl.ds(1, wo), :] = (
        m.reshape(ho, wo, cmid).astype(mid_ref.dtype))

    # 1x1 stride-2 downsample = parity group (0,0) (first cin_p lanes) @ wd
    xd = x_ref[0, pl.ds(1, ho), pl.ds(1, wo), pl.ds(0, cin_p)].reshape(ho * wo, cin_p)
    idn = jnp.dot(xd, wd_ref[...], preferred_element_type=jnp.float32) + bd_ref[...]

    def rd_m(a, b):
        return mid_ref[pl.ds(a, ho), pl.ds(b, wo), :].reshape(ho * wo, cmid)

    y = _tap_accumulate(rd_m, lambda t: w2_ref[t], 3, 3) + b2_ref[...]
    y = jnp.maximum(y + idn, 0.0)
    res = y.reshape(ho, wo, cmid).astype(o_ref.dtype)
    if halo:
        o_ref[...] = jnp.zeros(o_ref.shape, o_ref.dtype)
        o_ref[0, pl.ds(1, ho), pl.ds(1, wo), :] = res
    else:
        o_ref[0] = res


def resblock_s2_call(xpar, w1, b1, w2, b2, wd, bd, *, ho, wo, cin_p, halo,
                     out_dtype=jnp.bfloat16):
    bsz = xpar.shape[0]
    cmid = w2.shape[-1]
    hp, wp = (ho + 2, wo + 2) if halo else (ho, wo)
    kern = functools.partial(_resblock_s2_kernel, ho=ho, wo=wo, cin_p=cin_p,
                             halo=halo)
    return pl.pallas_call(
        kern,
        grid=(bsz,),
        in_specs=[
            pl.BlockSpec((1,) + xpar.shape[1:], lambda i: (i, 0, 0, 0)),
            pl.BlockSpec(w1.shape, lambda i: (0, 0, 0)),
            pl.BlockSpec(b1.shape, lambda i: (0, 0)),
            pl.BlockSpec(w2.shape, lambda i: (0, 0, 0)),
            pl.BlockSpec(b2.shape, lambda i: (0, 0)),
            pl.BlockSpec(wd.shape, lambda i: (0, 0)),
            pl.BlockSpec(bd.shape, lambda i: (0, 0)),
        ],
        out_specs=pl.BlockSpec((1, hp, wp, cmid), lambda i: (i, 0, 0, 0)),
        out_shape=jax.ShapeDtypeStruct((bsz, hp, wp, cmid), out_dtype),
        scratch_shapes=[pltpu.VMEM((ho + 2, wo + 2, cmid), jnp.bfloat16)],
        compiler_params=_cparams(),
    )(xpar, w1, b1, w2, b2, wd, bd)


# --------------------------------------------------------------------------
# Fused fc_mu / fc_logvar (both stages) + reparameterization + decoder fc
# --------------------------------------------------------------------------
def _latent_kernel(f_ref, w1_ref, b1_ref, wmu_ref, bmu_ref, wlv_ref, blv_ref,
                   eps_ref, wd_ref, bd_ref, mu_ref, lv_ref, d_ref):
    h = jnp.dot(f_ref[...], w1_ref[...],
                preferred_element_type=jnp.float32) + b1_ref[...]
    h = jnp.maximum(h, 0.0).astype(jnp.bfloat16)
    hm = h[:, :128]
    hl = h[:, 128:]
    mu = jnp.dot(hm, wmu_ref[...], preferred_element_type=jnp.float32) + bmu_ref[...]
    lv = jnp.dot(hl, wlv_ref[...], preferred_element_type=jnp.float32) + blv_ref[...]
    z = mu + eps_ref[...] * jnp.exp(0.5 * lv)
    d = jnp.dot(z.astype(jnp.bfloat16), wd_ref[...],
                preferred_element_type=jnp.float32) + bd_ref[...]
    mu_ref[...] = mu
    lv_ref[...] = lv
    d_ref[...] = d.astype(d_ref.dtype)


def latent_call(feat, head, eps_pad):
    bsz = feat.shape[0]
    args = (feat, head["w1"], head["b1"], head["wmu"], head["bmu"],
            head["wlv"], head["blv"], eps_pad, head["wdec"], head["bdec"])
    flat = head["wdec"].shape[-1]
    return pl.pallas_call(
        _latent_kernel,
        grid=(1,),
        in_specs=[pl.BlockSpec(a.shape, lambda i: (0, 0)) for a in args],
        out_specs=(pl.BlockSpec((bsz, 128), lambda i: (0, 0)),
                   pl.BlockSpec((bsz, 128), lambda i: (0, 0)),
                   pl.BlockSpec((bsz, flat), lambda i: (0, 0))),
        out_shape=(jax.ShapeDtypeStruct((bsz, 128), jnp.float32),
                   jax.ShapeDtypeStruct((bsz, 128), jnp.float32),
                   jax.ShapeDtypeStruct((bsz, flat), jnp.bfloat16)),
        compiler_params=_cparams(parallel=False),
    )(*args)


# --------------------------------------------------------------------------
# XLA-side layout helpers
# --------------------------------------------------------------------------
def space_to_parity(x):
    """(B,H,W,C) -> (B,H/2,W/2,4*C); group g=2*pa+pb holds x[:, pa::2, pb::2, :]."""
    bsz, h, w, c = x.shape
    x = x.reshape(bsz, h // 2, 2, w // 2, 2, c)
    x = x.transpose(0, 1, 3, 2, 4, 5)
    return x.reshape(bsz, h // 2, w // 2, 4 * c)


def max_pool_3x3_s2_p1(x):
    # TODO(synk): MaxPool2d stays in XLA (lax.reduce_window), not a Pallas kernel.
    return lax.reduce_window(
        x, jnp.asarray(-jnp.inf, x.dtype), lax.max,
        window_dimensions=(1, 3, 3, 1), window_strides=(1, 2, 2, 1),
        padding=((0, 0), (1, 1), (1, 1), (0, 0)))


def conv_transpose_layer(x, w, b, *, act, out_dtype=jnp.bfloat16):
    """ConvTranspose2d(3, s=2, p=1, op=1) as one 2x2-tap Pallas conv producing the
    4 output parities, interleaved back to NHWC in XLA (tiny transpose)."""
    bsz, hh, ww, _ = x.shape
    cout = w.shape[-1] // 4
    xp = jnp.pad(x, ((0, 0), (0, 1), (0, 1), (0, 0)))
    y = conv_call(xp, w, b, kd=2, kb=2, ho=hh, wo=ww, act=act, halo=False,
                  out_dtype=out_dtype)
    # TODO(synk): parity groups could be carried through to the next layer to skip
    # this transpose, but that needs strided in-kernel stores; kept in XLA.
    y = y.reshape(bsz, hh, ww, 2, 2, cout).transpose(0, 1, 3, 2, 4, 5)
    return y.reshape(bsz, 2 * hh, 2 * ww, cout)


# --------------------------------------------------------------------------
# Weight packing (matmul / tap-loop ready, channel-padded, bf16)
# --------------------------------------------------------------------------
def pack_s1_conv(w, b, cin_p, cout_p):
    cout, cin, k, _ = w.shape
    wt = np.zeros((k * k, cin_p, cout_p), np.float32)
    for a in range(k):
        for bb in range(k):
            wt[a * k + bb, :cin, :cout] = w[:, :, a, bb].T
    bt = np.zeros((1, cout_p), np.float32)
    bt[0, :cout] = b
    return jnp.asarray(wt, jnp.bfloat16), jnp.asarray(bt)


def pack_s2_conv(w, b, cin_p, cout_p):
    """kxk stride-2 pad=(k-1)//2 conv consumed from a parity-grouped input whose
    per-group channel width is cin_p.  k=3 -> 2x2 taps, k=7 -> 4x4 taps."""
    cout, cin, k, _ = w.shape
    pad = (k - 1) // 2
    offs = [(a - pad) // 2 for a in range(k)]
    pad_top = -min(offs)
    kd = max(offs) - min(offs) + 1
    wt = np.zeros((kd * kd, 4 * cin_p, cout_p), np.float32)
    for a in range(k):
        pa, da = (a - pad) % 2, offs[a] + pad_top
        for bb in range(k):
            pb, db = (bb - pad) % 2, offs[bb] + pad_top
            g = 2 * pa + pb
            wt[da * kd + db, g * cin_p:g * cin_p + cin, :cout] += w[:, :, a, bb].T
    bt = np.zeros((1, cout_p), np.float32)
    bt[0, :cout] = b
    return jnp.asarray(wt, jnp.bfloat16), jnp.asarray(bt)


def pack_down_conv(w, b, cin_p, cout_p):
    cout, cin = w.shape[:2]
    wt = np.zeros((cin_p, cout_p), np.float32)
    wt[:cin, :cout] = w[:, :, 0, 0].T
    bt = np.zeros((1, cout_p), np.float32)
    bt[0, :cout] = b
    return jnp.asarray(wt, jnp.bfloat16), jnp.asarray(bt)


def pack_convT(w, b, cin_p, cout_p):
    """ConvTranspose2d(3, s=2, p=1, op=1) as a 2x2-tap conv over the (bottom/right
    zero-padded) input; output columns = 4 output-parity groups (g = 2*pi + pj)."""
    cin, cout = w.shape[:2]
    per_dim = {0: [(1, 0)], 1: [(0, 1), (2, 0)]}     # out parity -> [(kernel a, tap da)]
    wt = np.zeros((4, cin_p, 4 * cout_p), np.float32)
    for pi in (0, 1):
        for pj in (0, 1):
            g = 2 * pi + pj
            for a, da in per_dim[pi]:
                for bb, db in per_dim[pj]:
                    wt[da * 2 + db, :cin, g * cout_p:g * cout_p + cout] += w[:, :, a, bb]
    bt = np.zeros((1, 4 * cout_p), np.float32)
    for g in range(4):
        bt[0, g * cout_p:g * cout_p + cout] = b
    return jnp.asarray(wt, jnp.bfloat16), jnp.asarray(bt)


def pack_linear(W, b, k_p, n_p, in_perm=None, out_perm=None):
    out_f, in_f = W.shape
    if in_perm is not None:
        W = W[:, in_perm]
    if out_perm is not None:
        W = W[out_perm, :]
        b = b[out_perm]
    wt = np.zeros((k_p, n_p), np.float32)
    wt[:in_f, :out_f] = W.T
    bt = np.zeros((1, n_p), np.float32)
    bt[0, :out_f] = b
    return jnp.asarray(wt, jnp.bfloat16), jnp.asarray(bt)


# --------------------------------------------------------------------------
# Synthetic, deterministic parameters (eval-mode BN folded into each conv)
# --------------------------------------------------------------------------
def make_params(seed=0):
    rng = np.random.default_rng(seed)

    def normal(shape, std):
        return (std * rng.standard_normal(shape)).astype(np.float32)

    def conv_bn(cout, cin, k):
        w = normal((cout, cin, k, k), 1.0 / np.sqrt(cin * k * k))
        gamma = 1.0 + normal((cout,), 0.1)
        beta = normal((cout,), 0.1)
        return w * (gamma / np.sqrt(1.0 + BN_EPS))[:, None, None, None], beta

    p = {}
    w, b = conv_bn(64, 3, 7)
    p["stem"] = pack_s2_conv(w, b, _pad_c(3), _pad_c(64))

    layers = []
    for li, (cin, cout, nblocks) in enumerate(RESNET34_LAYERS):
        cin_p, cout_p = _pad_c(cin), _pad_c(cout)
        entry = {}
        start = 0
        if li > 0:
            w1, b1 = conv_bn(cout, cin, 3)
            w2, b2 = conv_bn(cout, cout, 3)
            wd, bd = conv_bn(cout, cin, 1)
            entry["block0"] = (pack_s2_conv(w1, b1, cin_p, cout_p)
                               + pack_s1_conv(w2, b2, cout_p, cout_p)
                               + pack_down_conv(wd, bd, cin_p, cout_p))
            start = 1
        w1s, b1s, w2s, b2s = [], [], [], []
        for _ in range(start, nblocks):
            w1, b1 = conv_bn(cout, cout, 3)
            w2, b2 = conv_bn(cout, cout, 3)
            a1, c1 = pack_s1_conv(w1, b1, cout_p, cout_p)
            a2, c2 = pack_s1_conv(w2, b2, cout_p, cout_p)
            w1s.append(a1); b1s.append(c1); w2s.append(a2); b2s.append(c2)
        entry["blocks"] = (jnp.stack(w1s), jnp.stack(b1s),
                           jnp.stack(w2s), jnp.stack(b2s))
        layers.append(entry)
    p["layers"] = layers

    s = TARGET_IMAGE_SIZE // 32
    flat = 512 * s * s
    # NHWC flatten order <-> PyTorch CHW flatten order
    perm = np.arange(flat).reshape(512, s, s).transpose(1, 2, 0).reshape(-1)
    mu1_W, mu1_b = normal((128, flat), 1 / np.sqrt(flat)), normal((128,), 0.1)
    lv1_W, lv1_b = normal((128, flat), 1 / np.sqrt(flat)), normal((128,), 0.1)
    mu2_W, mu2_b = normal((LATENT_DIM, 128), 1 / np.sqrt(128)), normal((LATENT_DIM,), 0.1)
    lv2_W, lv2_b = normal((LATENT_DIM, 128), 1 / np.sqrt(128)), normal((LATENT_DIM,), 0.1)
    fc_W, fc_b = normal((flat, LATENT_DIM), 1 / np.sqrt(LATENT_DIM)), normal((flat,), 0.1)

    w1, b1 = pack_linear(np.concatenate([mu1_W, lv1_W], 0),
                         np.concatenate([mu1_b, lv1_b]), flat, 256, in_perm=perm)
    wmu, bmu = pack_linear(mu2_W, mu2_b, 128, 128)
    wlv, blv = pack_linear(lv2_W, lv2_b, 128, 128)
    wdec, bdec = pack_linear(fc_W, fc_b, 128, flat, out_perm=perm)
    p["head"] = dict(w1=w1, b1=b1, wmu=wmu, bmu=bmu, wlv=wlv, blv=blv,
                     wdec=wdec, bdec=bdec)

    dec = []
    for i, (cin, cout) in enumerate(DECODER_CHANNELS):
        cin_p = _pad_c(cin)
        cout_p = 32 if i == len(DECODER_CHANNELS) - 1 else _pad_c(cout)  # 4*32 = 128 lanes
        wt = normal((cin, cout, 3, 3), 1.0 / np.sqrt(cin * 9))
        bt = normal((cout,), 0.05)
        dec.append(pack_convT(wt, bt, cin_p, cout_p))
    p["dec"] = dec
    return p


# --------------------------------------------------------------------------
# Forward pass
# --------------------------------------------------------------------------
def _forward(params, x, eps):
    bsz = x.shape[0]
    s = TARGET_IMAGE_SIZE // 32

    # ---- encoder (ResNet34 backbone, eval-mode BN folded) ----
    h = jnp.transpose(x, (0, 2, 3, 1)).astype(jnp.bfloat16)            # NHWC
    h = jnp.pad(h, ((0, 0), (0, 0), (0, 0), (0, _pad_c(3) - 3)))
    par = space_to_parity(h)                                           # (B,32,32,32)
    par = jnp.pad(par, ((0, 0), (2, 1), (2, 1), (0, 0)))               # k=7 parity halo
    h = conv_call(par, *params["stem"], kd=4, kb=4, ho=32, wo=32,
                  act="relu", halo=False)                              # (B,32,32,128)
    h = max_pool_3x3_s2_p1(h)                                          # (B,16,16,128)

    sp = 16
    for li, (cin, _, _) in enumerate(RESNET34_LAYERS):
        entry = params["layers"][li]
        if li == 0:
            h = jnp.pad(h, ((0, 0), (1, 1), (1, 1), (0, 0)))           # halo for conv taps
        else:
            sp //= 2
            par = space_to_parity(h)                                   # stride-2 stage
            par = jnp.pad(par, ((0, 0), (1, 0), (1, 0), (0, 0)))       # k=3 parity halo
            h = resblock_s2_call(par, *entry["block0"], ho=sp, wo=sp,
                                 cin_p=_pad_c(cin), halo=True)         # padded output
        h = resblocks_call(h, *entry["blocks"], ho=sp, wo=sp, halo=False)
    feat = h.reshape(bsz, -1)                                          # (B,2048) NHWC order

    # ---- fc_mu / fc_logvar + reparameterization + decoder fc (fused) ----
    eps_pad = jnp.pad(eps.astype(jnp.float32), ((0, 0), (0, 128 - LATENT_DIM)))
    mu_p, lv_p, d = latent_call(feat, params["head"], eps_pad)
    mu, logvar = mu_p[:, :LATENT_DIM], lv_p[:, :LATENT_DIM]

    # ---- decoder ----
    d = d.reshape(bsz, s, s, 512)
    n_dec = len(params["dec"])
    for i, (wt, bt) in enumerate(params["dec"]):
        last = i == n_dec - 1
        d = conv_transpose_layer(d, wt, bt, act="tanh" if last else "relu",
                                 out_dtype=jnp.float32 if last else jnp.bfloat16)
    recon = jnp.transpose(d[:, :, :, :3], (0, 3, 1, 2))                # NHWC -> NCHW
    return recon, mu, logvar


vae_forward = jax.jit(_forward)


# --------------------------------------------------------------------------
# Numerical validation of the hand-derived decompositions (vs lax references)
# --------------------------------------------------------------------------
def _q(a):
    return jnp.asarray(a, jnp.bfloat16).astype(jnp.float32)


def _pad_ch(x, cp):
    return jnp.pad(jnp.asarray(x, jnp.bfloat16),
                   ((0, 0), (0, 0), (0, 0), (0, cp - x.shape[-1])))


def _conv_ref(x, w, b, stride, pad):
    out = lax.conv_general_dilated(
        x, jnp.transpose(w, (2, 3, 1, 0)), (stride, stride),
        ((pad, pad), (pad, pad)), dimension_numbers=("NHWC", "HWIO", "NHWC"),
        precision=lax.Precision.HIGHEST)
    return out + b.reshape(1, 1, 1, -1)


def _convT_ref(x, w, b):
    wf = jnp.transpose(jnp.flip(w, (2, 3)), (2, 3, 0, 1))
    out = lax.conv_general_dilated(
        x, wf, (1, 1), ((1, 2), (1, 2)), lhs_dilation=(2, 2),
        dimension_numbers=("NHWC", "HWIO", "NHWC"),
        precision=lax.Precision.HIGHEST)
    return out + b.reshape(1, 1, 1, -1)


def _check_s2_conv(rng):
    cin, cout, hh = 3, 16, 16
    x = rng.standard_normal((1, hh, hh, cin)).astype(np.float32)
    w = (rng.standard_normal((cout, cin, 7, 7)) / np.sqrt(cin * 49)).astype(np.float32)
    b = (0.1 * rng.standard_normal((cout,))).astype(np.float32)
    ref = _conv_ref(_q(x), _q(w), jnp.asarray(b), 2, 3)
    wt, bt = pack_s2_conv(w, b, _pad_c(cin), 128)
    xp = jnp.pad(space_to_parity(_pad_ch(x, _pad_c(cin))),
                 ((0, 0), (2, 1), (2, 1), (0, 0)))
    out = conv_call(xp, wt, bt, kd=4, kb=4, ho=hh // 2, wo=hh // 2,
                    act="none", halo=False, out_dtype=jnp.float32)
    np.testing.assert_allclose(np.asarray(out[..., :cout]), np.asarray(ref),
                               rtol=2e-2, atol=2e-2)


def _check_convT(rng):
    cin, cout, hh = 32, 16, 4
    x = rng.standard_normal((1, hh, hh, cin)).astype(np.float32)
    w = (rng.standard_normal((cin, cout, 3, 3)) / np.sqrt(cin * 9)).astype(np.float32)
    b = (0.1 * rng.standard_normal((cout,))).astype(np.float32)
    ref = _convT_ref(_q(x), _q(w), jnp.asarray(b))
    wt, bt = pack_convT(w, b, _pad_c(cin), 128)
    out = conv_transpose_layer(_pad_ch(x, _pad_c(cin)), wt, bt, act="none",
                               out_dtype=jnp.float32)
    np.testing.assert_allclose(np.asarray(out[..., :cout]), np.asarray(ref),
                               rtol=2e-2, atol=2e-2)


def _check_block_s2(rng):
    cin, cout, hh = 16, 32, 8
    cin_p, cout_p = _pad_c(cin), _pad_c(cout)
    x = rng.standard_normal((1, hh, hh, cin)).astype(np.float32)
    w1 = (rng.standard_normal((cout, cin, 3, 3)) / np.sqrt(cin * 9)).astype(np.float32)
    w2 = (rng.standard_normal((cout, cout, 3, 3)) / np.sqrt(cout * 9)).astype(np.float32)
    wd = (rng.standard_normal((cout, cin, 1, 1)) / np.sqrt(cin)).astype(np.float32)
    b1, b2, bd = [(0.1 * rng.standard_normal((cout,))).astype(np.float32)
                  for _ in range(3)]
    xq = _q(x)
    hmid = _q(jnp.maximum(_conv_ref(xq, _q(w1), jnp.asarray(b1), 2, 1), 0.0))
    idn = _conv_ref(xq, _q(wd), jnp.asarray(bd), 2, 0)
    ref = jnp.maximum(_conv_ref(hmid, _q(w2), jnp.asarray(b2), 1, 1) + idn, 0.0)
    pk = (pack_s2_conv(w1, b1, cin_p, cout_p) + pack_s1_conv(w2, b2, cout_p, cout_p)
          + pack_down_conv(wd, bd, cin_p, cout_p))
    xp = jnp.pad(space_to_parity(_pad_ch(x, cin_p)), ((0, 0), (1, 0), (1, 0), (0, 0)))
    out = resblock_s2_call(xp, *pk, ho=hh // 2, wo=hh // 2, cin_p=cin_p,
                           halo=False, out_dtype=jnp.float32)
    np.testing.assert_allclose(np.asarray(out[..., :cout]), np.asarray(ref),
                               rtol=2e-2, atol=2e-2)


def _check_blocks_s1(rng):
    c, hh, nb = 16, 8, 2
    cp = _pad_c(c)
    x = rng.standard_normal((1, hh, hh, c)).astype(np.float32)
    refx = _q(x)
    w1l, b1l, w2l, b2l = [], [], [], []
    for _ in range(nb):
        w1 = (rng.standard_normal((c, c, 3, 3)) / np.sqrt(c * 9)).astype(np.float32)
        w2 = (rng.standard_normal((c, c, 3, 3)) / np.sqrt(c * 9)).astype(np.float32)
        b1 = (0.1 * rng.standard_normal((c,))).astype(np.float32)
        b2 = (0.1 * rng.standard_normal((c,))).astype(np.float32)
        hmid = _q(jnp.maximum(_conv_ref(refx, _q(w1), jnp.asarray(b1), 1, 1), 0.0))
        refx = _q(jnp.maximum(_conv_ref(hmid, _q(w2), jnp.asarray(b2), 1, 1) + refx, 0.0))
        a1, c1 = pack_s1_conv(w1, b1, cp, cp)
        a2, c2 = pack_s1_conv(w2, b2, cp, cp)
        w1l.append(a1); b1l.append(c1); w2l.append(a2); b2l.append(c2)
    xp = jnp.pad(_pad_ch(x, cp), ((0, 0), (1, 1), (1, 1), (0, 0)))
    out = resblocks_call(xp, jnp.stack(w1l), jnp.stack(b1l),
                         jnp.stack(w2l), jnp.stack(b2l),
                         ho=hh, wo=hh, halo=False, out_dtype=jnp.float32)
    np.testing.assert_allclose(np.asarray(out[..., :c]), np.asarray(refx),
                               rtol=2e-2, atol=2e-2)


# --------------------------------------------------------------------------
if __name__ == "__main__":
    # validate the hand-derived conv / conv-transpose decompositions first
    vrng = np.random.default_rng(0)
    _check_s2_conv(vrng)
    _check_convT(vrng)
    _check_block_s2(vrng)
    _check_blocks_s1(vrng)

    key = jax.random.PRNGKey(0)
    k_x, k_eps = jax.random.split(key)
    B = 2
    x = jax.random.normal(k_x, (B, 3, TARGET_IMAGE_SIZE, TARGET_IMAGE_SIZE),
                          jnp.float32)
    eps = jax.random.normal(k_eps, (B, LATENT_DIM), jnp.float32)   # torch.randn_like(std)

    params = make_params(seed=0)

    recon, mu, logvar = vae_forward(params, x, eps)
    recon, mu, logvar = map(jax.block_until_ready, (recon, mu, logvar))

    assert recon.shape == (B, 3, TARGET_IMAGE_SIZE, TARGET_IMAGE_SIZE), recon.shape
    assert mu.shape == (B, LATENT_DIM) and logvar.shape == (B, LATENT_DIM)
    assert bool(jnp.all(jnp.isfinite(recon)))
    assert bool(jnp.all(jnp.isfinite(mu))) and bool(jnp.all(jnp.isfinite(logvar)))
    assert bool(jnp.all(jnp.abs(recon) <= 1.0 + 1e-5))   # tanh output range

    print("KERNEL_OK")
</pallas_src>

<mosaic_0001>
module attributes {stable_mosaic.version = 11 : i64} {
  func.func @_conv_kernel(%arg0: i32, %arg1: memref<1x11x11x32xbf16, #tpu.memory_space<vmem>>, %arg2: memref<16x32x128xbf16, #tpu.memory_space<vmem>>, %arg3: memref<1x128xf32, #tpu.memory_space<vmem>>, %arg4: memref<1x8x8x128xf32, #tpu.memory_space<vmem>>) attributes {dimension_semantics = [#tpu.dimension_semantics<parallel>], iteration_bounds = array<i64: 1>, scalar_prefetch = 0 : i64, scratch_operands = 0 : i64, tpu.core_type = #tpu.core_type<tc>, window_params = [{transform_indices = @transform_0, window_bounds = array<i64: 1, 11, 11, 32>}, {pipeline_mode = #tpu.pipeline_mode<synchronous>, transform_indices = @transform_1, window_bounds = array<i64: 16, 32, 128>}, {pipeline_mode = #tpu.pipeline_mode<synchronous>, transform_indices = @transform_2, window_bounds = array<i64: 1, 128>}, {transform_indices = @transform_3, window_bounds = array<i64: 1, 8, 8, 128>}]} {
    %c0 = arith.constant 0 : index
    %c0_0 = arith.constant 0 : index
    %c0_1 = arith.constant 0 : index
    %c0_2 = arith.constant 0 : index
    %0 = vector.load %arg1[%c0, %c0_0, %c0_1, %c0_2] : memref<1x11x11x32xbf16, #tpu.memory_space<vmem>>, vector<1x8x8x32xbf16>
    %1 = vector.shape_cast %0 : vector<1x8x8x32xbf16> to vector<8x8x32xbf16>
    %2 = vector.shape_cast %1 : vector<8x8x32xbf16> to vector<64x32xbf16>
    %c0_3 = arith.constant 0 : index
    %c0_4 = arith.constant 0 : index
    %c0_5 = arith.constant 0 : index
    %3 = vector.load %arg2[%c0_3, %c0_4, %c0_5] : memref<16x32x128xbf16, #tpu.memory_space<vmem>>, vector<1x32x128xbf16>
    %4 = vector.shape_cast %3 : vector<1x32x128xbf16> to vector<32x128xbf16>
    %cst = arith.constant dense<0.000000e+00> : vector<64x128xf32>
    %5 = tpu.matmul %2, %4, %cst {dimension_numbers = #tpu.dot_dimension_numbers<[1], [0], [0], [1], [0, 0, 1, 1], [], []>} : vector<64x32xbf16>, vector<32x128xbf16>, vector<64x128xf32> -> vector<64x128xf32>
    %c0_6 = arith.constant 0 : index
    %c0_7 = arith.constant 0 : index
    %c1 = arith.constant 1 : index
    %c0_8 = arith.constant 0 : index
    %6 = vector.load %arg1[%c0_6, %c0_7, %c1, %c0_8] : memref<1x11x11x32xbf16, #tpu.memory_space<vmem>>, vector<1x8x8x32xbf16>
    %7 = vector.shape_cast %6 : vector<1x8x8x32xbf16> to vector<8x8x32xbf16>
    %8 = vector.shape_cast %7 : vector<8x8x32xbf16> to vector<64x32xbf16>
    %c1_9 = arith.constant 1 : index
    %c0_10 = arith.constant 0 : index
    %c0_11 = arith.constant 0 : index
    %9 = vector.load %arg2[%c1_9, %c0_10, %c0_11] : memref<16x32x128xbf16, #tpu.memory_space<vmem>>, vector<1x32x128xbf16>
    %10 = vector.shape_cast %9 : vector<1x32x128xbf16> to vector<32x128xbf16>
    %cst_12 = arith.constant dense<0.000000e+00> : vector<64x128xf32>
    %11 = tpu.matmul %8, %10, %cst_12 {dimension_numbers = #tpu.dot_dimension_numbers<[1], [0], [0], [1], [0, 0, 1, 1], [], []>} : vector<64x32xbf16>, vector<32x128xbf16>, vector<64x128xf32> -> vector<64x128xf32>
    %12 = arith.addf %5, %11 : vector<64x128xf32>
    %c0_13 = arith.constant 0 : index
    %c0_14 = arith.constant 0 : index
    %c2 = arith.constant 2 : index
    %c0_15 = arith.constant 0 : index
    %13 = vector.load %arg1[%c0_13, %c0_14, %c2, %c0_15] : memref<1x11x11x32xbf16, #tpu.memory_space<vmem>>, vector<1x8x8x32xbf16>
    %14 = vector.shape_cast %13 : vector<1x8x8x32xbf16> to vector<8x8x32xbf16>
    %15 = vector.shape_cast %14 : vector<8x8x32xbf16> to vector<64x32xbf16>
    %c2_16 = arith.constant 2 : index
    %c0_17 = arith.constant 0 : index
    %c0_18 = arith.constant 0 : index
    %16 = vector.load %arg2[%c2_16, %c0_17, %c0_18] : memref<16x32x128xbf16, #tpu.memory_space<vmem>>, vector<1x32x128xbf16>
    %17 = vector.shape_cast %16 : vector<1x32x128xbf16> to vector<32x128xbf16>
    %cst_19 = arith.constant dense<0.000000e+00> : vector<64x128xf32>
    %18 = tpu.matmul %15, %17, %cst_19 {dimension_numbers = #tpu.dot_dimension_numbers<[1], [0], [0], [1], [0, 0, 1, 1], [], []>} : vector<64x32xbf16>, vector<32x128xbf16>, vector<64x128xf32> -> vector<64x128xf32>
    %19 = arith.addf %12, %18 : vector<64x128xf32>
    %c0_20 = arith.constant 0 : index
    %c0_21 = arith.constant 0 : index
    %c3 = arith.constant 3 : index
    %c0_22 = arith.constant 0 : index
    %20 = vector.load %arg1[%c0_20, %c0_21, %c3, %c0_22] : memref<1x11x11x32xbf16, #tpu.memory_space<vmem>>, vector<1x8x8x32xbf16>
    %21 = vector.shape_cast %20 : vector<1x8x8x32xbf16> to vector<8x8x32xbf16>
    %22 = vector.shape_cast %21 : vector<8x8x32xbf16> to vector<64x32xbf16>
    %c3_23 = arith.constant 3 : index
    %c0_24 = arith.constant 0 : index
    %c0_25 = arith.constant 0 : index
    %23 = vector.load %arg2[%c3_23, %c0_24, %c0_25] : memref<16x32x128xbf16, #tpu.memory_space<vmem>>, vector<1x32x128xbf16>
    %24 = vector.shape_cast %23 : vector<1x32x128xbf16> to vector<32x128xbf16>
    %cst_26 = arith.constant dense<0.000000e+00> : vector<64x128xf32>
    %25 = tpu.matmul %22, %24, %cst_26 {dimension_numbers = #tpu.dot_dimension_numbers<[1], [0], [0], [1], [0, 0, 1, 1], [], []>} : vector<64x32xbf16>, vector<32x128xbf16>, vector<64x128xf32> -> vector<64x128xf32>
    %26 = arith.addf %19, %25 : vector<64x128xf32>
    %c0_27 = arith.constant 0 : index
    %c1_28 = arith.constant 1 : index
    %c0_29 = arith.constant 0 : index
    %c0_30 = arith.constant 0 : index
    %27 = vector.load %arg1[%c0_27, %c1_28, %c0_29, %c0_30] : memref<1x11x11x32xbf16, #tpu.memory_space<vmem>>, vector<1x8x8x32xbf16>
    %28 = vector.shape_cast %27 : vector<1x8x8x32xbf16> to vector<8x8x32xbf16>
    %29 = vector.shape_cast %28 : vector<8x8x32xbf16> to vector<64x32xbf16>
    %c4 = arith.constant 4 : index
    %c0_31 = arith.constant 0 : index
    %c0_32 = arith.constant 0 : index
    %30 = vector.load %arg2[%c4, %c0_31, %c0_32] : memref<16x32x128xbf16, #tpu.memory_space<vmem>>, vector<1x32x128xbf16>
    %31 = vector.shape_cast %30 : vector<1x32x128xbf16> to vector<32x128xbf16>
    %cst_33 = arith.constant dense<0.000000e+00> : vector<64x128xf32>
    %32 = tpu.matmul %29, %31, %cst_33 {dimension_numbers = #tpu.dot_dimension_numbers<[1], [0], [0], [1], [0, 0, 1, 1], [], []>} : vector<64x32xbf16>, vector<32x128xbf16>, vector<64x128xf32> -> vector<64x128xf32>
    %33 = arith.addf %26, %32 : vector<64x128xf32>
    %c0_34 = arith.constant 0 : index
    %c1_35 = arith.constant 1 : index
    %c1_36 = arith.constant 1 : index
    %c0_37 = arith.constant 0 : index
    %34 = vector.load %arg1[%c0_34, %c1_35, %c1_36, %c0_37] : memref<1x11x11x32xbf16, #tpu.memory_space<vmem>>, vector<1x8x8x32xbf16>
    %35 = vector.shape_cast %34 : vector<1x8x8x32xbf16> to vector<8x8x32xbf16>
    %36 = vector.shape_cast %35 : vector<8x8x32xbf16> to vector<64x32xbf16>
    %c5 = arith.constant 5 : index
    %c0_38 = arith.constant 0 : index
    %c0_39 = arith.constant 0 : index
    %37 = vector.load %arg2[%c5, %c0_38, %c0_39] : memref<16x32x128xbf16, #tpu.memory_space<vmem>>, vector<1x32x128xbf16>
    %38 = vector.shape_cast %37 : vector<1x32x128xbf16> to vector<32x128xbf16>
    %cst_40 = arith.constant dense<0.000000e+00> : vector<64x128xf32>
    %39 = tpu.matmul %36, %38, %cst_40 {dimension_numbers = #tpu.dot_dimension_numbers<[1], [0], [0], [1], [0, 0, 1, 1], [], []>} : vector<64x32xbf16>, vector<32x128xbf16>, vector<64x128xf32> -> vector<64x128xf32>
    %40 = arith.addf %33, %39 : vector<64x128xf32>
    %c0_41 = arith.constant 0 : index
    %c1_42 = arith.constant 1 : index
    %c2_43 = arith.constant 2 : index
    %c0_44 = arith.constant 0 : index
    %41 = vector.load %arg1[%c0_41, %c1_42, %c2_43, %c0_44] : memref<1x11x11x32xbf16, #tpu.memory_space<vmem>>, vector<1x8x8x32xbf16>
    %42 = vector.shape_cast %41 : vector<1x8x8x32xbf16> to vector<8x8x32xbf16>
    %43 = vector.shape_cast %42 : vector<8x8x32xbf16> to vector<64x32xbf16>
    %c6 = arith.constant 6 : index
    %c0_45 = arith.constant 0 : index
    %c0_46 = arith.constant 0 : index
    %44 = vector.load %arg2[%c6, %c0_45, %c0_46] : memref<16x32x128xbf16, #tpu.memory_space<vmem>>, vector<1x32x128xbf16>
    %45 = vector.shape_cast %44 : vector<1x32x128xbf16> to vector<32x128xbf16>
    %cst_47 = arith.constant dense<0.000000e+00> : vector<64x128xf32>
    %46 = tpu.matmul %43, %45, %cst_47 {dimension_numbers = #tpu.dot_dimension_numbers<[1], [0], [0], [1], [0, 0, 1, 1], [], []>} : vector<64x32xbf16>, vector<32x128xbf16>, vector<64x128xf32> -> vector<64x128xf32>
    %47 = arith.addf %40, %46 : vector<64x128xf32>
    %c0_48 = arith.constant 0 : index
    %c1_49 = arith.constant 1 : index
    %c3_50 = arith.constant 3 : index
    %c0_51 = arith.constant 0 : index
    %48 = vector.load %arg1[%c0_48, %c1_49, %c3_50, %c0_51] : memref<1x11x11x32xbf16, #tpu.memory_space<vmem>>, vector<1x8x8x32xbf16>
    %49 = vector.shape_cast %48 : vector<1x8x8x32xbf16> to vector<8x8x32xbf16>
    %50 = vector.shape_cast %49 : vector<8x8x32xbf16> to vector<64x32xbf16>
    %c7 = arith.constant 7 : index
    %c0_52 = arith.constant 0 : index
    %c0_53 = arith.constant 0 : index
    %51 = vector.load %arg2[%c7, %c0_52, %c0_53] : memref<16x32x128xbf16, #tpu.memory_space<vmem>>, vector<1x32x128xbf16>
    %52 = vector.shape_cast %51 : vector<1x32x128xbf16> to vector<32x128xbf16>
    %cst_54 = arith.constant dense<0.000000e+00> : vector<64x128xf32>
    %53 = tpu.matmul %50, %52, %cst_54 {dimension_numbers = #tpu.dot_dimension_numbers<[1], [0], [0], [1], [0, 0, 1, 1], [], []>} : vector<64x32xbf16>, vector<32x128xbf16>, vector<64x128xf32> -> vector<64x128xf32>
    %54 = arith.addf %47, %53 : vector<64x128xf32>
    %c0_55 = arith.constant 0 : index
    %c2_56 = arith.constant 2 : index
    %c0_57 = arith.constant 0 : index
    %c0_58 = arith.constant 0 : index
    %55 = vector.load %arg1[%c0_55, %c2_56, %c0_57, %c0_58] : memref<1x11x11x32xbf16, #tpu.memory_space<vmem>>, vector<1x8x8x32xbf16>
    %56 = vector.shape_cast %55 : vector<1x8x8x32xbf16> to vector<8x8x32xbf16>
    %57 = vector.shape_cast %56 : vector<8x8x32xbf16> to vector<64x32xbf16>
    %c8 = arith.constant 8 : index
    %c0_59 = arith.constant 0 : index
    %c0_60 = arith.constant 0 : index
    %58 = vector.load %arg2[%c8, %c0_59, %c0_60] : memref<16x32x128xbf16, #tpu.memory_space<vmem>>, vector<1x32x128xbf16>
    %59 = vector.shape_cast %58 : vector<1x32x128xbf16> to vector<32x128xbf16>
    %cst_61 = arith.constant dense<0.000000e+00> : vector<64x128xf32>
    %60 = tpu.matmul %57, %59, %cst_61 {dimension_numbers = #tpu.dot_dimension_numbers<[1], [0], [0], [1], [0, 0, 1, 1], [], []>} : vector<64x32xbf16>, vector<32x128xbf16>, vector<64x128xf32> -> vector<64x128xf32>
    %61 = arith.addf %54, %60 : vector<64x128xf32>
    %c0_62 = arith.constant 0 : index
    %c2_63 = arith.constant 2 : index
    %c1_64 = arith.constant 1 : index
    %c0_65 = arith.constant 0 : index
    %62 = vector.load %arg1[%c0_62, %c2_63, %c1_64, %c0_65] : memref<1x11x11x32xbf16, #tpu.memory_space<vmem>>, vector<1x8x8x32xbf16>
    %63 = vector.shape_cast %62 : vector<1x8x8x32xbf16> to vector<8x8x32xbf16>
    %64 = vector.shape_cast %63 : vector<8x8x32xbf16> to vector<64x32xbf16>
    %c9 = arith.constant 9 : index
    %c0_66 = arith.constant 0 : index
    %c0_67 = arith.constant 0 : index
    %65 = vector.load %arg2[%c9, %c0_66, %c0_67] : memref<16x32x128xbf16, #tpu.memory_space<vmem>>, vector<1x32x128xbf16>
    %66 = vector.shape_cast %65 : vector<1x32x128xbf16> to vector<32x128xbf16>
    %cst_68 = arith.constant dense<0.000000e+00> : vector<64x128xf32>
    %67 = tpu.matmul %64, %66, %cst_68 {dimension_numbers = #tpu.dot_dimension_numbers<[1], [0], [0], [1], [0, 0, 1, 1], [], []>} : vector<64x32xbf16>, vector<32x128xbf16>, vector<64x128xf32> -> vector<64x128xf32>
    %68 = arith.addf %61, %67 : vector<64x128xf32>
    %c0_69 = arith.constant 0 : index
    %c2_70 = arith.constant 2 : index
    %c2_71 = arith.constant 2 : index
    %c0_72 = arith.constant 0 : index
    %69 = vector.load %arg1[%c0_69, %c2_70, %c2_71, %c0_72] : memref<1x11x11x32xbf16, #tpu.memory_space<vmem>>, vector<1x8x8x32xbf16>
    %70 = vector.shape_cast %69 : vector<1x8x8x32xbf16> to vector<8x8x32xbf16>
    %71 = vector.shape_cast %70 : vector<8x8x32xbf16> to vector<64x32xbf16>
    %c10 = arith.constant 10 : index
    %c0_73 = arith.constant 0 : index
    %c0_74 = arith.constant 0 : index
    %72 = vector.load %arg2[%c10, %c0_73, %c0_74] : memref<16x32x128xbf16, #tpu.memory_space<vmem>>, vector<1x32x128xbf16>
    %73 = vector.shape_cast %72 : vector<1x32x128xbf16> to vector<32x128xbf16>
    %cst_75 = arith.constant dense<0.000000e+00> : vector<64x128xf32>
    %74 = tpu.matmul %71, %73, %cst_75 {dimension_numbers = #tpu.dot_dimension_numbers<[1], [0], [0], [1], [0, 0, 1, 1], [], []>} : vector<64x32xbf16>, vector<32x128xbf16>, vector<64x128xf32> -> vector<64x128xf32>
    %75 = arith.addf %68, %74 : vector<64x128xf32>
    %c0_76 = arith.constant 0 : index
    %c2_77 = arith.constant 2 : index
    %c3_78 = arith.constant 3 : index
    %c0_79 = arith.constant 0 : index
    %76 = vector.load %arg1[%c0_76, %c2_77, %c3_78, %c0_79] : memref<1x11x11x32xbf16, #tpu.memory_space<vmem>>, vector<1x8x8x32xbf16>
    %77 = vector.shape_cast %76 : vector<1x8x8x32xbf16> to vector<8x8x32xbf16>
    %78 = vector.shape_cast %77 : vector<8x8x32xbf16> to vector<64x32xbf16>
    %c11 = arith.constant 11 : index
    %c0_80 = arith.constant 0 : index
    %c0_81 = arith.constant 0 : index
    %79 = vector.load %arg2[%c11, %c0_80, %c0_81] : memref<16x32x128xbf16, #tpu.memory_space<vmem>>, vector<1x32x128xbf16>
    %80 = vector.shape_cast %79 : vector<1x32x128xbf16> to vector<32x128xbf16>
    %cst_82 = arith.constant dense<0.000000e+00> : vector<64x128xf32>
    %81 = tpu.matmul %78, %80, %cst_82 {dimension_numbers = #tpu.dot_dimension_numbers<[1], [0], [0], [1], [0, 0, 1, 1], [], []>} : vector<64x32xbf16>, vector<32x128xbf16>, vector<64x128xf32> -> vector<64x128xf32>
    %82 = arith.addf %75, %81 : vector<64x128xf32>
    %c0_83 = arith.constant 0 : index
    %c3_84 = arith.constant 3 : index
    %c0_85 = arith.constant 0 : index
    %c0_86 = arith.constant 0 : index
    %83 = vector.load %arg1[%c0_83, %c3_84, %c0_85, %c0_86] : memref<1x11x11x32xbf16, #tpu.memory_space<vmem>>, vector<1x8x8x32xbf16>
    %84 = vector.shape_cast %83 : vector<1x8x8x32xbf16> to vector<8x8x32xbf16>
    %85 = vector.shape_cast %84 : vector<8x8x32xbf16> to vector<64x32xbf16>
    %c12 = arith.constant 12 : index
    %c0_87 = arith.constant 0 : index
    %c0_88 = arith.constant 0 : index
    %86 = vector.load %arg2[%c12, %c0_87, %c0_88] : memref<16x32x128xbf16, #tpu.memory_space<vmem>>, vector<1x32x128xbf16>
    %87 = vector.shape_cast %86 : vector<1x32x128xbf16> to vector<32x128xbf16>
    %cst_89 = arith.constant dense<0.000000e+00> : vector<64x128xf32>
    %88 = tpu.matmul %85, %87, %cst_89 {dimension_numbers = #tpu.dot_dimension_numbers<[1], [0], [0], [1], [0, 0, 1, 1], [], []>} : vector<64x32xbf16>, vector<32x128xbf16>, vector<64x128xf32> -> vector<64x128xf32>
    %89 = arith.addf %82, %88 : vector<64x128xf32>
    %c0_90 = arith.constant 0 : index
    %c3_91 = arith.constant 3 : index
    %c1_92 = arith.constant 1 : index
    %c0_93 = arith.constant 0 : index
    %90 = vector.load %arg1[%c0_90, %c3_91, %c1_92, %c0_93] : memref<1x11x11x32xbf16, #tpu.memory_space<vmem>>, vector<1x8x8x32xbf16>
    %91 = vector.shape_cast %90 : vector<1x8x8x32xbf16> to vector<8x8x32xbf16>
    %92 = vector.shape_cast %91 : vector<8x8x32xbf16> to vector<64x32xbf16>
    %c13 = arith.constant 13 : index
    %c0_94 = arith.constant 0 : index
    %c0_95 = arith.constant 0 : index
    %93 = vector.load %arg2[%c13, %c0_94, %c0_95] : memref<16x32x128xbf16, #tpu.memory_space<vmem>>, vector<1x32x128xbf16>
    %94 = vector.shape_cast %93 : vector<1x32x128xbf16> to vector<32x128xbf16>
    %cst_96 = arith.constant dense<0.000000e+00> : vector<64x128xf32>
    %95 = tpu.matmul %92, %94, %cst_96 {dimension_numbers = #tpu.dot_dimension_numbers<[1], [0], [0], [1], [0, 0, 1, 1], [], []>} : vector<64x32xbf16>, vector<32x128xbf16>, vector<64x128xf32> -> vector<64x128xf32>
    %96 = arith.addf %89, %95 : vector<64x128xf32>
    %c0_97 = arith.constant 0 : index
    %c3_98 = arith.constant 3 : index
    %c2_99 = arith.constant 2 : index
    %c0_100 = arith.constant 0 : index
    %97 = vector.load %arg1[%c0_97, %c3_98, %c2_99, %c0_100] : memref<1x11x11x32xbf16, #tpu.memory_space<vmem>>, vector<1x8x8x32xbf16>
    %98 = vector.shape_cast %97 : vector<1x8x8x32xbf16> to vector<8x8x32xbf16>
    %99 = vector.shape_cast %98 : vector<8x8x32xbf16> to vector<64x32xbf16>
    %c14 = arith.constant 14 : index
    %c0_101 = arith.constant 0 : index
    %c0_102 = arith.constant 0 : index
    %100 = vector.load %arg2[%c14, %c0_101, %c0_102] : memref<16x32x128xbf16, #tpu.memory_space<vmem>>, vector<1x32x128xbf16>
    %101 = vector.shape_cast %100 : vector<1x32x128xbf16> to vector<32x128xbf16>
    %cst_103 = arith.constant dense<0.000000e+00> : vector<64x128xf32>
    %102 = tpu.matmul %99, %101, %cst_103 {dimension_numbers = #tpu.dot_dimension_numbers<[1], [0], [0], [1], [0, 0, 1, 1], [], []>} : vector<64x32xbf16>, vector<32x128xbf16>, vector<64x128xf32> -> vector<64x128xf32>
    %103 = arith.addf %96, %102 : vector<64x128xf32>
    %c0_104 = arith.constant 0 : index
    %c3_105 = arith.constant 3 : index
    %c3_106 = arith.constant 3 : index
    %c0_107 = arith.constant 0 : index
    %104 = vector.load %arg1[%c0_104, %c3_105, %c3_106, %c0_107] : memref<1x11x11x32xbf16, #tpu.memory_space<vmem>>, vector<1x8x8x32xbf16>
    %105 = vector.shape_cast %104 : vector<1x8x8x32xbf16> to vector<8x8x32xbf16>
    %106 = vector.shape_cast %105 : vector<8x8x32xbf16> to vector<64x32xbf16>
    %c15 = arith.constant 15 : index
    %c0_108 = arith.constant 0 : index
    %c0_109 = arith.constant 0 : index
    %107 = vector.load %arg2[%c15, %c0_108, %c0_109] : memref<16x32x128xbf16, #tpu.memory_space<vmem>>, vector<1x32x128xbf16>
    %108 = vector.shape_cast %107 : vector<1x32x128xbf16> to vector<32x128xbf16>
    %cst_110 = arith.constant dense<0.000000e+00> : vector<64x128xf32>
    %109 = tpu.matmul %106, %108, %cst_110 {dimension_numbers = #tpu.dot_dimension_numbers<[1], [0], [0], [1], [0, 0, 1, 1], [], []>} : vector<64x32xbf16>, vector<32x128xbf16>, vector<64x128xf32> -> vector<64x128xf32>
    %110 = arith.addf %103, %109 : vector<64x128xf32>
    %c0_111 = arith.constant 0 : index
    %c0_112 = arith.constant 0 : index
    %111 = vector.load %arg3[%c0_111, %c0_112] : memref<1x128xf32, #tpu.memory_space<vmem>>, vector<1x128xf32>
    %112 = vector.broadcast %111 : vector<1x128xf32> to vector<64x128xf32>
    %113 = arith.addf %110, %112 : vector<64x128xf32>
    %114 = vector.shape_cast %113 : vector<64x128xf32> to vector<8x8x128xf32>
    %c0_113 = arith.constant 0 : index
    %c0_114 = arith.constant 0 : index
    %c0_115 = arith.constant 0 : index
    %c0_116 = arith.constant 0 : index
    %115 = vector.load %arg4[%c0_113, %c0_114, %c0_115, %c0_116] : memref<1x8x8x128xf32, #tpu.memory_space<vmem>>, vector<1x8x8x128xf32>
    %116 = vector.shape_cast %115 : vector<1x8x8x128xf32> to vector<8x8x128xf32>
    %117 = vector.shape_cast %114 : vector<8x8x128xf32> to vector<1x8x8x128xf32>
    tpu.vector_store %arg4[%c0_113, %c0_114, %c0_115, %c0_116], %117 {strides = array<i32>} : memref<1x8x8x128xf32, #tpu.memory_space<vmem>>, vector<1x8x8x128xf32>,
    return
  }
  func.func @transform_0(%arg0: i32) -> (i32, i32, i32, i32) {
    %c0_i32 = arith.constant 0 : i32
    %c0_i32_0 = arith.constant 0 : i32
    %c0_i32_1 = arith.constant 0 : i32
    %c0_i32_2 = arith.constant 0 : i32
    return %arg0, %c0_i32, %c0_i32_0, %c0_i32_1 : i32, i32, i32, i32
  }
  func.func @transform_1(%arg0: i32) -> (i32, i32, i32) {
    %c0_i32 = arith.constant 0 : i32
    %c0_i32_0 = arith.constant 0 : i32
    %c0_i32_1 = arith.constant 0 : i32
    %c0_i32_2 = arith.constant 0 : i32
    return %c0_i32, %c0_i32_0, %c0_i32_1 : i32, i32, i32
  }
  func.func @transform_2(%arg0: i32) -> (i32, i32) {
    %c0_i32 = arith.constant 0 : i32
    %c0_i32_0 = arith.constant 0 : i32
    %c0_i32_1 = arith.constant 0 : i32
    return %c0_i32, %c0_i32_0 : i32, i32
  }
  func.func @transform_3(%arg0: i32) -> (i32, i32, i32, i32) {
    %c0_i32 = arith.constant 0 : i32
    %c0_i32_0 = arith.constant 0 : i32
    %c0_i32_1 = arith.constant 0 : i32
    %c0_i32_2 = arith.constant 0 : i32
    return %arg0, %c0_i32, %c0_i32_0, %c0_i32_1 : i32, i32, i32, i32
  }
}

</mosaic_0001>

<bundles_post_ra>
// kernel: tpu_custom_call.1
= control target key start
LH: loop header
LB: loop body
LE: loop exit
PB: predicated region body
PF: predicated region fallthrough
CT: control target
= control target key end

     0   :  { %8 = vsyncpa [#allocation3], 0  ;;  %s4836_s0 = inlined_call_operand.hbm [shape: bf16[1,11,11,32], index: 0, kind: input, shape index: {}]   ;;  %s4837_s1 = inlined_call_operand.hbm [shape: bf16[16,32,128], index: 1, kind: input, shape index: {}]   ;;  %s4838_s2 = inlined_call_operand.hbm [shape: f32[1,128], index: 2, kind: input, shape index: {}]   ;;  %s4839_s3 = inlined_call_operand.hbm [shape: f32[1,8,8,128], index: 3, kind: output, shape index: {}]  }
   0x1   :  { %9 = vsyncpa [#allocation6], 0 }
   0x2   :  { %10 = vsyncpa [#allocation4], 0  ;;  %s4067_s12 = smov [#allocation5]   ;;  %s4068_s14 = smov [#allocation2]  }
   0x3   :  { %s28_s13 = sshll.u32 %s4067_s12, 4  ;;  %s16_s15 = sshll.u32 %s4068_s14, 4  ;;  %s29_s13 = int_to_ptr.vmem [resolvable:$true] %s28_s13  ;;  %s4095_s15 = int_to_ptr.vmem [resolvable:$true] %s16_s15 }
   0x4   :  { %s3973_s18 = scalar_lea.hbm %s4837_s1, 4096 }
   0x5   :  { %p3974_p0 = scmp.ne.s32.totalorder %s4837_s1, %s3973_s18  ;;  %p3977_p1 = scmp.lt.u32.totalorder %s3973_s18, %s4837_s1 }
   0x7   :  { %p3979_p2 = pnand %p3977_p1, %p3974_p0 }
   0x9   :  { %3982 = shalt.err (!%p3979_p2)
}
   0xa   :  { %s3983_s23 = scalar_lea.vmem %s29_s13, 4096  ;;  %p3988_p4 = scmp.lt.s32.totalorder %s29_s13, %s29_s13 }
   0xb   :  { %p3984_p3 = scmp.ne.s32.totalorder %s29_s13, %s3983_s23  ;;  %p3989_p5 = scmp.lt.s32.totalorder %s3983_s23, %s3983_s23 }
   0xd   :  { %p3990_p6 = por %p3989_p5, %p3988_p4 }
   0xf   :  { %p3991_p7 = pnand %p3990_p6, %p3984_p3 }
  0x11   :  { %3994 = shalt.err (!%p3991_p7)
}
  0x12   :  { %s4069_s24 = smov 64   ;;  %s4070_s25 = smov 4  }
  0x13   :  { %34 = dma.hbm_to_vmem [thread:$0]  %s4837_s1, 4096, %s29_s13, [#allocation6], %s4069_s24, %s4069_s24, %s4070_s25  }
  0x14   :  { %s3995_s30 = scalar_lea.hbm %s4836_s0, 1408 }
  0x15   :  { %p3996_p8 = scmp.ne.s32.totalorder %s4836_s0, %s3995_s30  ;;  %p3999_p9 = scmp.lt.u32.totalorder %s3995_s30, %s4836_s0 }
  0x17   :  { %p4001_p10 = pnand %p3999_p9, %p3996_p8 }
  0x19   :  { %4004 = shalt.err (!%p4001_p10)
}
  0x1a   :  { %s4005_s8 = scalar_lea.vmem %s4095_s15, 1408  ;;  %p4010_p12 = scmp.lt.s32.totalorder %s4095_s15, %s4095_s15 }
  0x1b   :  { %p4006_p11 = scmp.ne.s32.totalorder %s4095_s15, %s4005_s8  ;;  %p4011_p13 = scmp.lt.s32.totalorder %s4005_s8, %s4005_s8 }
  0x1d   :  { %p4012_p0 = por %p4011_p13, %p4010_p12 }
  0x1f   :  { %p4013_p1 = pnand %p4012_p0, %p4006_p11 }
  0x21   :  { %4016 = shalt.err (!%p4013_p1)
}
  0x22   :  { %22 = dma.hbm_to_vmem [thread:$0]  %s4836_s0, 1408, %s4095_s15, [#allocation3], %s4069_s24, %s4069_s24, %s4070_s25  }
  0x23   :  { %s4071_s10 = smov [#allocation7]   ;;  %s4017_s14 = scalar_lea.hbm %s4838_s2, 16 }
  0x24   :  { %s41_s11 = sshll.u32 %s4071_s10, 4  ;;  %p4018_p2 = scmp.ne.s32.totalorder %s4838_s2, %s4017_s14  ;;  %s42_s11 = int_to_ptr.vmem [resolvable:$true] %s41_s11 }
  0x25   :  { %p4021_p3 = scmp.lt.u32.totalorder %s4017_s14, %s4838_s2 }
  0x27   :  { %p4023_p4 = pnand %p4021_p3, %p4018_p2 }
  0x29   :  { %4026 = shalt.err (!%p4023_p4)
}
  0x2a   :  { %s4027_s20 = scalar_lea.vmem %s42_s11, 16  ;;  %s4031_s0 = scalar_lea.vmem %s42_s11, 32 }
  0x2b   :  { %p4028_p5 = scmp.ne.s32.totalorder %s42_s11, %s4027_s20  ;;  %p4032_p6 = scmp.lt.s32.totalorder %s42_s11, %s42_s11 }
  0x2c   :  { %p4033_p7 = scmp.lt.s32.totalorder %s4031_s0, %s4027_s20 }
  0x2e   :  { %p4034_p8 = por %p4033_p7, %p4032_p6 }
  0x30   :  { %p4035_p9 = pnand %p4034_p8, %p4028_p5 }
  0x32   :  { %4038 = shalt.err (!%p4035_p9)
}
  0x33   :  { %44 = dma.hbm_to_vmem [thread:$0]  %s4838_s2, 16, %s42_s11, [#allocation6]  }
  0x34   :  { %4061 = dma.done.wait [#allocation3], 1408  }
  0x35   :  { %4062 = vsyncadd [#allocation3], 4294965888 }
  0x36   :  { %4063 = dma.done.wait [#allocation6], 4112  }
  0x37   :  { %4064 = vsyncadd [#allocation6], 4294963184  ;;  %v3925_v0 = vld [vmem:[#allocation5 + $0x80] sm:$0xff]   ;;  %v3926_v1 = vld [vmem:[#allocation5 + $0x10] sm:$0xff]   ;;  %vm75_vm0 = vsmask.f32 3328 }
  0x38   :  { %vm76_vm1 = vsmask.f32 7440  ;;  %3701 = vmatprep.subr.bf16.mxu0 %v3925_v0  ;;  %v3927_v2 = vld [vmem:[#allocation5 + $0x88] sm:$0xff]   ;;  %3605 = vmatprep.subr.bf16.mxu1 %v3926_v1  ;;  %v3928_v3 = vld [vmem:[#allocation5 + $0x18] sm:$0xff]   ;;  %vm219_vm2 = vcmask 261120   ;;  %v4156_v24 = vld [vmem:[#allocation5] sm:$0xff]  }
  0x39   :  { %3702 = vmatpush3.bf16.msra.mxu0 %v3925_v0  ;;  %3606 = vmatpush3.bf16.msra.mxu1 %v3926_v1  ;;  %v3929_v4 = vld [vmem:[#allocation2 + $0x10] ss:$8 sps:$4 sm:$0xff]   ;;  %v3930_v5 = vld [vmem:[#allocation2 + $0x20] ss:$8 sps:$4 sm:$0xff]   ;;  %v4143_v8 = vld [vmem:[#allocation2 + $0x4] sm:$0x1] }
  0x3a   :  { %3703 = vmatprep.subr.bf16.mxu0 %v3927_v2  ;;  %3607 = vmatprep.subr.bf16.mxu1 %v3928_v3  ;;  %v4139_v6 = vld [vmem:[#allocation2] sm:$0xf]  ;;  %v4141_v7 = vld [vmem:[#allocation2 + $0x8] sm:$0xf]  ;;  %v4145_v9 = vld [vmem:[#allocation2 + $0xc] sm:$0x1] }
  0x3b   :  { %3705 = vmatprep.mubr.msk.bf16.mxu0 %vm219_vm2, %v3929_v4  ;;  %v79_v10 = vshrl.u32 %v4139_v6, 16  ;;  %v82_v11 = vshll.u32 %v4139_v6, 16  ;;  %v88_v12 = vshll.u32 %v4143_v8, 16  ;;  %v93_v13 = vshrl.u32 %v4141_v7, 16  ;;  %v3932_v25 = vld [vmem:[#allocation5 + $0x90] sm:$0xff]   ;;  %vm4164_vm3 = vmor %vm75_vm0, %vm76_vm1  ;;  %v3936_v57 = vld [vmem:[#allocation5 + $0x98] sm:$0xff]  }
  0x3c   :  { %v96_v14 = vshll.u32 %v4141_v7, 16  ;;  %v102_v15 = vshll.u32 %v4145_v9, 16  ;;  %v435_v16 = vrot.slane %v4143_v8, 5  ;;  %v439_v17 = vrot.slane %v4145_v9, 5  ;;  %v4158_v27 = vld [vmem:[#allocation2 + $0x10] sm:$0xf] }
  0x3d   :  { %3704 = vmatpush3.bf16.msra.mxu0 %v3927_v2  ;;  %3608 = vmatpush3.bf16.msra.mxu1 %v3928_v3  ;;  %v81_v18 = vrot.slane %v79_v10, 4  ;;  %v84_v19 = vrot.slane %v82_v11, 5  ;;  %v90_v20 = vrot.slane %v88_v12, 5  ;;  %v95_v21 = vrot.slane %v93_v13, 4  ;;  %v4160_v28 = vld [vmem:[#allocation2 + $0x18] sm:$0xf] }
  0x3e   :  { %v98_v22 = vrot.slane %v96_v14, 5  ;;  %v104_v23 = vrot.slane %v102_v15, 5  ;;  %3617 = vmatprep.subr.bf16.mxu1 %v4156_v24  ;;  %3713 = vmatprep.subr.bf16.mxu0 %v3932_v25  ;;  %v4169_v31 = vld [vmem:[#allocation2 + $0x14] sm:$0x1]  ;;  %v4171_v32 = vld [vmem:[#allocation2 + $0x1c] sm:$0x1] }
  0x3f   :  { %v85_v26 = vor.u32 %v84_v19, %v81_v18  ;;  %v107_v33 = vshrl.u32 %v4158_v27, 16  ;;  %v110_v34 = vshll.u32 %v4158_v27, 16  ;;  %v116_v36 = vshll.u32 %v4169_v31, 16  ;;  %v3933_v47 = vld [vmem:[#allocation2 + $0x30] ss:$8 sps:$4 sm:$0xff]   ;;  %v3935_v11 = vld [vmem:[#allocation5 + $0x8] sm:$0xff]  }
  0x40   :  { %3706 = vmatmul.mubr.msk.bf16.vlgmr.msra.gmra.mrb[0].mxu0 %vm219_vm2, %v3930_v5  ;;  %v99_v30 = vor.u32 %v98_v22, %v95_v21  ;;  %v121_v37 = vshrl.u32 %v4160_v28, 16  ;;  %v124_v38 = vshll.u32 %v4160_v28, 16  ;;  %v130_v42 = vshll.u32 %v4171_v32, 16  ;;  %v3934_v55 = vld [vmem:[#allocation2 + $0x40] ss:$8 sps:$4 sm:$0xff]   ;;  %v4206_v18 = vld [vmem:[#allocation5 + $0xa0] sm:$0xff]  }
  0x41   :  { %v86_v35 = vrot.slane %v85_v26, 4  ;;  %3714 = vmatpush3.bf16.msra.mxu0 %v3932_v25  ;;  %v109_v40 = vrot.slane %v107_v33, 4  ;;  %v112_v41 = vrot.slane %v110_v34, 5  ;;  %v118_v44 = vrot.slane %v116_v36, 5  ;;  %3709 = vmatprep.mubr.msk.bf16.mxu0 %vm219_vm2, %v3933_v47  ;;  %v4186_v56 = vld [vmem:[#allocation2 + $0x20] sm:$0xf] }
  0x42   :  { %v100_v39 = vrot.slane %v99_v30, 4  ;;  %v123_v45 = vrot.slane %v121_v37, 4  ;;  %v126_v46 = vrot.slane %v124_v38, 5  ;;  %v132_v50 = vrot.slane %v130_v42, 5  ;;  %v4188_v59 = vld [vmem:[#allocation2 + $0x28] sm:$0xf]  ;;  %3715 = vmatprep.subr.bf16.mxu0 %v3936_v57 }
  0x43   :  { %v91_v43 = vsel %vm4164_vm3, %v86_v35, %v90_v20  ;;  %v113_v49 = vor.u32 %v112_v41, %v109_v40  ;;  %v443_v51 = vrot.slane %v4169_v31, 5  ;;  %v447_v54 = vrot.slane %v4171_v32, 5  ;;  %v4190_v60 = vld [vmem:[#allocation2 + $0x24] sm:$0x1]  ;;  %v4195_v63 = vld [vmem:[#allocation2 + $0x2c] sm:$0x1] }
  0x44   :  { %v105_v48 = vsel %vm4164_vm3, %v100_v39, %v104_v23  ;;  %v127_v53 = vor.u32 %v126_v46, %v123_v45  ;;  %v135_v61 = vshrl.u32 %v4186_v56, 16  ;;  %v138_v0 = vshll.u32 %v4186_v56, 16  ;;  %v4208_v23 = vld [vmem:[#allocation2 + $0x30] sm:$0xf]  ;;  %v4210_v25 = vld [vmem:[#allocation2 + $0x38] sm:$0xf] }
  0x45   :  { %v3316_v52 = vcombine.low %v91_v43, %v105_v48  ;;  %v114_v58 = vrot.slane %v113_v49, 4  ;;  %v144_v1 = vshll.u32 %v4190_v60, 16  ;;  %v149_v2 = vshrl.u32 %v4188_v59, 16  ;;  %3716 = vmatpush3.bf16.msra.mxu0 %v3936_v57  ;;  %v4212_v26 = vld [vmem:[#allocation2 + $0x34] sm:$0x1]  ;;  %v4227_v40 = vld [vmem:[#allocation5 + $0x20] sm:$0xff]  }
  0x46   :  { %v128_v62 = vrot.slane %v127_v53, 4  ;;  %v137_v4 = vrot.slane %v135_v61, 4  ;;  %v152_v5 = vshll.u32 %v4188_v59, 16  ;;  %v158_v10 = vshll.u32 %v4195_v63, 16  ;;  %3725 = vmatprep.subr.bf16.mxu0 %v4206_v18  ;;  %v4222_v36 = vld [vmem:[#allocation2 + $0x3c] sm:$0x1] }
  0x47   :  { %3609 = vmatprep.mubr.msk.bf16.mxu1 %vm219_vm2, %v3316_v52  ;;  %v119_v3 = vsel %vm4164_vm3, %v114_v58, %v118_v44  ;;  %v140_v13 = vrot.slane %v138_v0, 5  ;;  %v146_v14 = vrot.slane %v144_v1, 5  ;;  %v151_v15 = vrot.slane %v149_v2, 4  ;;  %v1788_v45 = vld [vmem:[#allocation2 + $0x10] sm:$0xf]  ;;  %s4072_s2 = smov [#allocation8]  }
  0x48   :  { %3710 = vmatmul.mubr.msk.bf16.gmra.mrb[4].mxu0 %vm219_vm2, %v3934_v55  ;;  %v133_v12 = vsel %vm4164_vm3, %v128_v62, %v132_v50  ;;  %v154_v20 = vrot.slane %v152_v5, 5  ;;  %v160_v21 = vrot.slane %v158_v10, 5  ;;  %v3326_v30 = vcombine.low %v4139_v6, %v4141_v7  ;;  %v4233_v50 = vld [vmem:[#allocation2 + $0x14] sm:$0x1]  ;;  %v1790_v57 = vld [vmem:[#allocation2 + $0x18] sm:$0xf] }
  0x49   :  { %v3317_v19 = vcombine.low %v119_v3, %v133_v12  ;;  %v141_v22 = vor.u32 %v140_v13, %v137_v4  ;;  %v3327_v33 = vcombine.low %v4158_v27, %v4160_v28  ;;  %v3328_v34 = vcombine.low %v4186_v56, %v4188_v59  ;;  %v4239_v62 = vld [vmem:[#allocation2 + $0x1c] sm:$0x1]  ;;  %v1792_v10 = vld [vmem:[#allocation2 + $0x20] sm:$0xf]  ;;  %v4242_v12 = vld [vmem:[#allocation2 + $0x24] sm:$0x1] }
  0x4a   :  { %v155_v35 = vor.u32 %v154_v20, %v151_v15  ;;  %v163_v37 = vshrl.u32 %v4208_v23, 16  ;;  %v166_v38 = vshll.u32 %v4208_v23, 16  ;;  %v172_v39 = vshll.u32 %v4212_v26, 16  ;;  %v1794_v20 = vld [vmem:[#allocation2 + $0x28] sm:$0xf]  ;;  %s3303_s22 = sshll.u32 %s4072_s2, 4  ;;  %s3304_s22 = int_to_ptr.vmem [resolvable:$true] %s3303_s22 }
  0x4b   :  { %3610 = vmatmul.mubr.msk.bf16.vlgmr.msra.gmra.mrb[0].mxu1 %vm219_vm2, %v3317_v19  ;;  %v142_v41 = vrot.slane %v141_v22, 4  ;;  %v177_v42 = vshrl.u32 %v4210_v25, 16  ;;  %v180_v43 = vshll.u32 %v4210_v25, 16  ;;  %v186_v44 = vshll.u32 %v4222_v36, 16  ;;  %v1802_v6 = vld [vmem:[#allocation2 + $0x48] sm:$0xf]  ;;  %p4044_p11 = scmp.lt.s32.totalorder %s3304_s22, %s3304_s22 }
  0x4c   :  { %3618 = vmatpush3.bf16.msra.mxu1 %v4156_v24  ;;  %v156_v46 = vrot.slane %v155_v35, 4  ;;  %v165_v47 = vrot.slane %v163_v37, 4  ;;  %v168_v48 = vrot.slane %v166_v38, 5  ;;  %v174_v49 = vrot.slane %v172_v39, 5  ;;  %v4247_v37 = vld [vmem:[#allocation2 + $0x2c] sm:$0x1] }
  0x4d   :  { %3619 = vmatprep.subr.bf16.mxu1 %v3935_v11  ;;  %v147_v52 = vsel %vm4164_vm3, %v142_v41, %v146_v14  ;;  %v179_v53 = vrot.slane %v177_v42, 4  ;;  %v182_v24 = vrot.slane %v180_v43, 5  ;;  %v188_v55 = vrot.slane %v186_v44, 5  ;;  %v4296_v27 = vld [vmem:[#allocation2 + $0x20] sm:$0xe]  ;;  %v4298_v28 = vld [vmem:[#allocation5 + $0x30] sm:$0xff]  }
  0x4e   :  { %v161_v58 = vsel %vm4164_vm3, %v156_v46, %v160_v21  ;;  %v169_v61 = vor.u32 %v168_v48, %v165_v47  ;;  %v1805_v0 = vshrl.u32 %v1788_v45, 16  ;;  %v1808_v1 = vshll.u32 %v1788_v45, 16  ;;  %v4309_v56 = vld [vmem:[#allocation2 + $0x28] sm:$0xe]  ;;  %v4311_v59 = vld [vmem:[#allocation2] sm:$0xe] }
  0x4f   :  { %v3318_v2 = vcombine.low %v147_v52, %v161_v58  ;;  %v183_v3 = vor.u32 %v182_v24, %v179_v53  ;;  %v1814_v4 = vshll.u32 %v4233_v50, 16  ;;  %v1819_v5 = vshrl.u32 %v1790_v57, 16  ;;  %v1796_v24 = vld [vmem:[#allocation2 + $0x30] sm:$0xf]  ;;  %s4039_s23 = scalar_lea.vmem %s3304_s22, 1024 }
  0x50   :  { %3620 = vmatpush3.bf16.msra.mxu1 %v3935_v11  ;;  %v170_v13 = vrot.slane %v169_v61, 4  ;;  %v1807_v14 = vrot.slane %v1805_v0, 4  ;;  %v1810_v15 = vrot.slane %v1808_v1, 5  ;;  %v1822_v19 = vshll.u32 %v1790_v57, 16  ;;  %p4040_p10 = scmp.ne.s32.totalorder %s3304_s22, %s4039_s23  ;;  %p4045_p12 = scmp.lt.s32.totalorder %s4039_s23, %s4039_s23 }
  0x51   :  { %3629 = vmatprep.subr.bf16.mxu1 %v4227_v40  ;;  %3613 = vmatprep.mubr.msk.bf16.mxu1 %vm219_vm2, %v3318_v2  ;;  %v184_v21 = vrot.slane %v183_v3, 4  ;;  %v1816_v22 = vrot.slane %v1814_v4, 5  ;;  %v1821_v35 = vrot.slane %v1819_v5, 4  ;;  %v1828_v11 = vshll.u32 %v4239_v62, 16  ;;  %v1798_v3 = vld [vmem:[#allocation2 + $0x38] sm:$0xf] }
  0x52   :  { %v175_v38 = vsel %vm4164_vm3, %v170_v13, %v174_v49  ;;  %v1811_v39 = vor.u32 %v1810_v15, %v1807_v14  ;;  %v1824_v41 = vrot.slane %v1822_v19, 5  ;;  %v1833_v42 = vshrl.u32 %v1792_v10, 16  ;;  %v4254_v49 = vld [vmem:[#allocation2 + $0x34] sm:$0x1]  ;;  %v4264_v14 = vld [vmem:[#allocation2 + $0x3c] sm:$0x1]  ;;  %p4046_p13 = por %p4045_p12, %p4044_p11 }
  0x53   :  { %v189_v43 = vsel %vm4164_vm3, %v184_v21, %v188_v55  ;;  %v1830_v44 = vrot.slane %v1828_v11, 5  ;;  %v1836_v45 = vshll.u32 %v1792_v10, 16  ;;  %v1842_v46 = vshll.u32 %v4242_v12, 16 }
  0x54   :  { %v3319_v47 = vcombine.low %v175_v38, %v189_v43  ;;  %v1812_v48 = vrot.slane %v1811_v39, 4  ;;  %v1825_v52 = vor.u32 %v1824_v41, %v1821_v35  ;;  %v1835_v53 = vrot.slane %v1833_v42, 4  ;;  %v1800_v35 = vld [vmem:[#allocation2 + $0x40] sm:$0xf]  ;;  %v4269_v42 = vld [vmem:[#allocation2 + $0x44] sm:$0x1]  ;;  %p4047_p0 = pnand %p4046_p13, %p4040_p10 }
  0x55   :  { %v1838_v57 = vrot.slane %v1836_v45, 5  ;;  %v1844_v58 = vrot.slane %v1842_v46, 5  ;;  %v1847_v61 = vshrl.u32 %v1794_v20, 16  ;;  %v1850_v0 = vshll.u32 %v1794_v20, 16  ;;  %v4272_v46 = vld [vmem:[#allocation2 + $0x4c] sm:$0x1] }
  0x56   :  { %vm430_vm4 = vcmask 1042432   ;;  %vm431_vm5 = vcmask 1046532   ;;  %3614 = vmatmul.mubr.msk.bf16.gmra.mrb[4].mxu1 %vm219_vm2, %v3319_v47  ;;  %v1817_v55 = vsel %vm4164_vm3, %v1812_v48, %v1816_v22  ;;  %v1826_v1 = vrot.slane %v1825_v52, 4 }
  0x57   :  { %v1856_v2 = vshll.u32 %v4247_v37, 16  ;;  %v1861_v4 = vshrl.u32 %v1796_v24, 16  ;;  %v1839_v5 = vor.u32 %v1838_v57, %v1835_v53  ;;  %v1849_v10 = vrot.slane %v1847_v61, 4  ;;  %3621 = vmatprep.mubr.msk.bf16.mxu1 %vm219_vm2, %v3326_v30  ;;  %vm4305_vm6 = vmor %vm430_vm4, %vm431_vm5 }
  0x58   :  { %v1852_v13 = vrot.slane %v1850_v0, 5  ;;  %v1864_v15 = vshll.u32 %v1796_v24, 16  ;;  %v1831_v19 = vsel %vm4164_vm3, %v1826_v1, %v1830_v44  ;;  %v1870_v22 = vshll.u32 %v4254_v49, 16  ;;  %v3942_v44 = vld [vmem:[#allocation5 + $0x28] sm:$0xff]  }
  0x59   :  { %v1858_v20 = vrot.slane %v1856_v2, 5  ;;  %v1863_v21 = vrot.slane %v1861_v4, 4  ;;  %v3422_v11 = vcombine.low %v1817_v55, %v1831_v19  ;;  %v1840_v38 = vrot.slane %v1839_v5, 4  ;;  %v3943_v4 = vld [vmem:[#allocation5 + $0xa8] sm:$0xff]   ;;  %v4286_v19 = vld [vmem:[#allocation2 + $0x18] sm:$0xe] }
  0x5a   :  { %v1853_v39 = vor.u32 %v1852_v13, %v1849_v10  ;;  %v1866_v41 = vrot.slane %v1864_v15, 5  ;;  %v1872_v7 = vrot.slane %v1870_v22, 5  ;;  %v1875_v30 = vshrl.u32 %v1798_v3, 16  ;;  %v4284_v15 = vld [vmem:[#allocation2 + $0x10] sm:$0xe] }
  0x5b   :  { %v1878_v43 = vshll.u32 %v1798_v3, 16  ;;  %v1884_v45 = vshll.u32 %v4264_v14, 16  ;;  %3717 = vmatprep.mubr.msk.bf16.mxu0 %vm219_vm2, %v3422_v11  ;;  %v1845_v47 = vsel %vm4164_vm3, %v1840_v38, %v1844_v58  ;;  %v1889_v53 = vshrl.u32 %v1800_v35, 16 }
  0x5c   :  { %v1854_v48 = vrot.slane %v1853_v39, 4  ;;  %v1867_v52 = vor.u32 %v1866_v41, %v1863_v21  ;;  %v1877_v24 = vrot.slane %v1875_v30, 4  ;;  %v1892_v0 = vshll.u32 %v1800_v35, 16  ;;  %v4316_v30 = vld [vmem:[#allocation2 + $0x8] sm:$0xe] }
  0x5d   :  { %v1880_v57 = vrot.slane %v1878_v43, 5  ;;  %v1886_v61 = vrot.slane %v1884_v45, 5  ;;  %v1891_v2 = vrot.slane %v1889_v53, 4  ;;  %v1898_v3 = vshll.u32 %v4269_v42, 16 }
  0x5e   :  { %v1859_v55 = vsel %vm4164_vm3, %v1854_v48, %v1858_v20  ;;  %v1868_v1 = vrot.slane %v1867_v52, 4  ;;  %3622 = vmatmul.mubr.msk.bf16.vlgmr.msra.gmra.mrb[0].mxu1 %vm219_vm2, %v3327_v33  ;;  %v1894_v10 = vrot.slane %v1892_v0, 5  ;;  %v1903_v13 = vshrl.u32 %v1802_v6, 16 }
  0x5f   :  { %v3423_v5 = vcombine.low %v1845_v47, %v1859_v55  ;;  %v1881_v58 = vor.u32 %v1880_v57, %v1877_v24  ;;  %3630 = vmatpush3.bf16.msra.mxu1 %v4227_v40  ;;  %v1900_v21 = vrot.slane %v1898_v3, 5  ;;  %v1906_v22 = vshll.u32 %v1802_v6, 16  ;;  %3625 = vmatprep.mubr.msk.bf16.mxu1 %vm219_vm2, %v3328_v34  ;;  %v4322_v47 = vld [vmem:[#allocation5 + $0xb0] sm:$0xff]   ;;  %v4341_v3 = vld [vmem:[#allocation2 + $0x30] sm:$0xe] }
  0x60   :  { %v1873_v20 = vsel %vm4164_vm3, %v1868_v1, %v1872_v7  ;;  %v1912_v35 = vshll.u32 %v4272_v46, 16  ;;  %v1895_v40 = vor.u32 %v1894_v10, %v1891_v2  ;;  %v1905_v11 = vrot.slane %v1903_v13, 4  ;;  %3631 = vmatprep.subr.bf16.mxu1 %v3942_v44  ;;  %v4352_v10 = vld [vmem:[#allocation2 + $0x38] sm:$0xe] }
  0x61   :  { %3718 = vmatmul.mubr.msk.bf16.vlgmr.msra.gmra.mrb[0].mxu0 %vm219_vm2, %v3423_v5  ;;  %v1882_v33 = vrot.slane %v1881_v58, 4  ;;  %v3329_v38 = vcombine.low %v4208_v23, %v4210_v25  ;;  %v1908_v34 = vrot.slane %v1906_v22, 5  ;;  %v3432_v6 = vrot.slane %v4284_v15, 9  ;;  %v4365_v22 = vld [vmem:[#allocation2 + $0x40] sm:$0xe] }
  0x62   :  { %3726 = vmatpush3.bf16.msra.mxu0 %v4206_v18  ;;  %v1914_v41 = vrot.slane %v1912_v35, 5  ;;  %v2056_v7 = vrot.slane %v4233_v50, 5  ;;  %v1896_v25 = vrot.slane %v1895_v40, 4  ;;  %v3433_v43 = vrot.slane %v4286_v19, 9  ;;  %v4367_v35 = vld [vmem:[#allocation2 + $0x48] sm:$0xe] }
  0x63   :  { %v1887_v23 = vsel %vm4164_vm3, %v1882_v33, %v1886_v61  ;;  %3727 = vmatprep.subr.bf16.mxu0 %v3943_v4  ;;  %v2060_v45 = vrot.slane %v4239_v62, 5  ;;  %v1909_v48 = vor.u32 %v1908_v34, %v1905_v11  ;;  %3632 = vmatpush3.bf16.msra.mxu1 %v3942_v44  ;;  %v3434_v50 = vrot.slane %v4296_v27, 9  ;;  %v4334_v61 = vld [vmem:[#allocation2 + $0x10] sm:$0xe]  ;;  %v4336_v44 = vld [vmem:[#allocation2 + $0x18] sm:$0xe] }
  0x64   :  { %v3424_v18 = vcombine.low %v1873_v20, %v1887_v23  ;;  %v2057_v52 = vsel %vm4305_vm6, %v3432_v6, %v2056_v7  ;;  %v1901_v53 = vsel %vm4164_vm3, %v1896_v25, %v1900_v21  ;;  %v2064_v57 = vrot.slane %v4242_v12, 5  ;;  %3641 = vmatprep.subr.bf16.mxu1 %v4298_v28  ;;  %v4400_v25 = vld [vmem:[#allocation2 + $0x30] sm:$0xe] }
  0x65   :  { %v2061_v24 = vsel %vm4305_vm6, %v3433_v43, %v2060_v45  ;;  %v3435_v62 = vrot.slane %v4309_v56, 9  ;;  %v1910_v0 = vrot.slane %v1909_v48, 4  ;;  %v2068_v1 = vrot.slane %v4247_v37, 5  ;;  %v4410_v48 = vld [vmem:[#allocation2 + $0x38] sm:$0xe] }
  0x66   :  { %3721 = vmatprep.mubr.msk.bf16.mxu0 %vm219_vm2, %v3424_v18  ;;  %3728 = vmatpush3.bf16.msra.mxu0 %v3943_v4  ;;  %v3440_v55 = vcombine.low %v2057_v52, %v2061_v24  ;;  %v3336_v2 = vrot.slane %v4311_v59, 9  ;;  %v4346_v12 = vsel %vm4305_vm6, %v3434_v50, %v2064_v57  ;;  %v3337_v5 = vrot.slane %v4316_v30, 9  ;;  %v3947_v18 = vld [vmem:[#allocation5 + $0x38] sm:$0xff]  }
  0x67   :  { %3626 = vmatmul.mubr.msk.bf16.gmra.mrb[4].mxu1 %vm219_vm2, %v3329_v38  ;;  %3737 = vmatprep.subr.bf16.mxu0 %v4322_v47  ;;  %v3338_v58 = vrot.slane %v4334_v61, 9  ;;  %v3339_v4 = vrot.slane %v4336_v44, 9  ;;  %v1915_v37 = vsel %vm4164_vm3, %v1910_v0, %v1914_v41  ;;  %v4358_v13 = vsel %vm4305_vm6, %v3435_v62, %v2068_v1  ;;  %v4381_v38 = vld [vmem:[#allocation2 + $0x28] sm:$0xe]  ;;  %v2200_v24 = vld [vmem:[#allocation2 + $0x14] sm:$0x3] }
  0x68   :  { %v436_v20 = vsel %vm4305_vm6, %v3336_v2, %v435_v16  ;;  %v3436_v21 = vrot.slane %v4341_v3, 9  ;;  %v3425_v33 = vcombine.low %v1901_v53, %v1915_v37  ;;  %v3441_v40 = vcombine.low %v4346_v12, %v4358_v13  ;;  %v4379_v16 = vld [vmem:[#allocation2 + $0x20] sm:$0xe]  ;;  %v2201_v2 = vld [vmem:[#allocation2 + $0x1c] sm:$0x3] }
  0x69   :  { %v440_v11 = vsel %vm4305_vm6, %v3337_v5, %v439_v17  ;;  %v444_v8 = vsel %vm4305_vm6, %v3338_v58, %v443_v51  ;;  %v448_v41 = vsel %vm4305_vm6, %v3339_v4, %v447_v54  ;;  %v2072_v9 = vrot.slane %v4254_v49, 5  ;;  %v2202_v13 = vld [vmem:[#allocation2 + $0x24] sm:$0x3] }
  0x6a   :  { %v3344_v34 = vcombine.low %v436_v20, %v440_v11  ;;  %v3437_v6 = vrot.slane %v4352_v10, 9  ;;  %vm587_vm7 = vsmask.f32 2304  ;;  %vm588_vm8 = vsmask.f32 6416  ;;  %3722 = vmatmul.mubr.msk.bf16.gmra.mrb[4].mxu0 %vm219_vm2, %v3425_v33  ;;  %v4436_v33 = vld [vmem:[#allocation5 + $0x40] sm:$0xff]  }
  0x6b   :  { %v3345_v17 = vcombine.low %v444_v8, %v448_v41  ;;  %v2076_v31 = vrot.slane %v4264_v14, 5  ;;  %v3438_v51 = vrot.slane %v4365_v22, 9  ;;  %v2080_v7 = vrot.slane %v4269_v42, 5  ;;  %3729 = vmatprep.mubr.msk.bf16.mxu0 %vm219_vm2, %v3440_v55  ;;  %v3948_v55 = vld [vmem:[#allocation5 + $0xb8] sm:$0xff]   ;;  %vm4445_vm9 = vmor %vm587_vm7, %vm588_vm8 }
  0x6c   :  { %3633 = vmatprep.mubr.msk.bf16.mxu1 %vm219_vm2, %v3344_v34  ;;  %v2073_v32 = vsel %vm4305_vm6, %v3436_v21, %v2072_v9  ;;  %v3439_v54 = vrot.slane %v4367_v35, 9  ;;  %v2084_v49 = vrot.slane %v4272_v46, 5  ;;  %v3340_v23 = vrot.slane %v4379_v16, 9 }
  0x6d   :  { %v2077_v14 = vsel %vm4305_vm6, %v3437_v6, %v2076_v31  ;;  %v4406_v42 = vsel %vm4305_vm6, %v3438_v51, %v2080_v7  ;;  %v451_v43 = vrot.slane %v4190_v60, 5  ;;  %v3341_v45 = vrot.slane %v4381_v38, 9  ;;  %v4451_v7 = vld [vmem:[#allocation5 + $0xc0] sm:$0xff]  }
  0x6e   :  { %v3442_v52 = vcombine.low %v2073_v32, %v2077_v14  ;;  %v4414_v46 = vsel %vm4305_vm6, %v3439_v54, %v2084_v49  ;;  %v455_v50 = vrot.slane %v4195_v63, 5  ;;  %v3342_v53 = vrot.slane %v4400_v25, 9 }
  0x6f   :  { %3634 = vmatmul.mubr.msk.bf16.vlgmr.msra.gmra.mrb[0].mxu1 %vm219_vm2, %v3345_v17  ;;  %v3443_v60 = vcombine.low %v4406_v42, %v4414_v46  ;;  %v452_v57 = vsel %vm4305_vm6, %v3340_v23, %v451_v43  ;;  %v459_v62 = vrot.slane %v4212_v26, 5  ;;  %v3343_v0 = vrot.slane %v4410_v48, 9  ;;  %v2203_v43 = vld [vmem:[#allocation2 + $0x2c] sm:$0x3] }
  0x70   :  { %3642 = vmatpush3.bf16.msra.mxu1 %v4298_v28  ;;  %v456_v63 = vsel %vm4305_vm6, %v3341_v45, %v455_v50  ;;  %v463_v1 = vrot.slane %v4222_v36, 5  ;;  %v2209_v12 = vshrl.u32 %v4284_v15, 16  ;;  %v2212_v5 = vshll.u32 %v4284_v15, 16 }
  0x71   :  { %v3346_v58 = vcombine.low %v452_v57, %v456_v63  ;;  %3643 = vmatprep.subr.bf16.mxu1 %v3947_v18  ;;  %v460_v26 = vsel %vm4305_vm6, %v3342_v53, %v459_v62  ;;  %v2218_v4 = vshrl.u32 %v2200_v24, 16  ;;  %v2221_v37 = vshll.u32 %v2200_v24, 16 }
  0x72   :  { %v464_v28 = vsel %vm4305_vm6, %v3343_v0, %v463_v1  ;;  %v2211_v20 = vrot.slane %v2209_v12, 5  ;;  %v2214_v21 = vrot.slane %v2212_v5, 6  ;;  %v2227_v36 = vshrl.u32 %v4286_v19, 16  ;;  %3730 = vmatmul.mubr.msk.bf16.vlgmr.msra.gmra.mrb[0].mxu0 %vm219_vm2, %v3441_v40  ;;  %v579_v1 = vld [vmem:[#allocation2 + $0x4] sm:$0x3] }
  0x73   :  { %3637 = vmatprep.mubr.msk.bf16.mxu1 %vm219_vm2, %v3346_v58  ;;  %v3347_v15 = vcombine.low %v460_v26, %v464_v28  ;;  %v2220_v11 = vrot.slane %v2218_v4, 5  ;;  %v2223_v8 = vrot.slane %v2221_v37, 6  ;;  %v2230_v34 = vshll.u32 %v4286_v19, 16  ;;  %3738 = vmatpush3.bf16.msra.mxu0 %v4322_v47  ;;  %v580_v58 = vld [vmem:[#allocation2 + $0xc] sm:$0x3] }
  0x74   :  { %3733 = vmatprep.mubr.msk.bf16.mxu0 %vm219_vm2, %v3442_v52  ;;  %v2215_v41 = vor.u32 %v2214_v21, %v2211_v20  ;;  %v2229_v9 = vrot.slane %v2227_v36, 5  ;;  %v2236_v6 = vshrl.u32 %v2201_v2, 16  ;;  %v2239_v17 = vshll.u32 %v2201_v2, 16  ;;  %3739 = vmatprep.subr.bf16.mxu0 %v3948_v55 }
  0x75   :  { %3644 = vmatpush3.bf16.msra.mxu1 %v3947_v18  ;;  %v2224_v31 = vor.u32 %v2223_v8, %v2220_v11  ;;  %v2232_v51 = vrot.slane %v2230_v34, 6  ;;  %v2245_v19 = vshrl.u32 %v4296_v27, 16  ;;  %v2248_v47 = vshll.u32 %v4296_v27, 16 }
  0x76   :  { %v2216_v32 = vrot.slane %v2215_v41, 4  ;;  %v2238_v54 = vrot.slane %v2236_v6, 5  ;;  %v2241_v49 = vrot.slane %v2239_v17, 6  ;;  %v2254_v23 = vshrl.u32 %v2202_v13, 16  ;;  %3653 = vmatprep.subr.bf16.mxu1 %v4436_v33  ;;  %v581_v41 = vld [vmem:[#allocation2 + $0x14] sm:$0x3] }
  0x77   :  { %3638 = vmatmul.mubr.msk.bf16.gmra.mrb[4].mxu1 %vm219_vm2, %v3347_v15  ;;  %v2233_v14 = vor.u32 %v2232_v51, %v2229_v9  ;;  %v2247_v45 = vrot.slane %v2245_v19, 5  ;;  %v2250_v18 = vrot.slane %v2248_v47, 6  ;;  %v2257_v52 = vshll.u32 %v2202_v13, 16  ;;  %3740 = vmatpush3.bf16.msra.mxu0 %v3948_v55 }
  0x78   :  { %v2225_v50 = vsel %vm4445_vm9, %v2216_v32, %v2224_v31  ;;  %v2242_v27 = vor.u32 %v2241_v49, %v2238_v54  ;;  %v2256_v53 = vrot.slane %v2254_v23, 5  ;;  %v2263_v24 = vshrl.u32 %v4309_v56, 16  ;;  %3749 = vmatprep.subr.bf16.mxu0 %v4451_v7 }
  0x79   :  { %v2234_v57 = vrot.slane %v2233_v14, 4  ;;  %v2251_v62 = vor.u32 %v2250_v18, %v2247_v45  ;;  %v2259_v0 = vrot.slane %v2257_v52, 6  ;;  %v2266_v63 = vshll.u32 %v4309_v56, 16  ;;  %v582_v18 = vld [vmem:[#allocation2 + $0x1c] sm:$0x3]  ;;  %v3952_v52 = vld [vmem:[#allocation5 + $0xc8] sm:$0xff]  }
  0x7a   :  { %v2265_v2 = vrot.slane %v2263_v24, 5  ;;  %v2272_v12 = vshrl.u32 %v2203_v43, 16  ;;  %v2275_v5 = vshll.u32 %v2203_v43, 16  ;;  %v591_v55 = vshrl.u32 %v4311_v59, 16  ;;  %3734 = vmatmul.mubr.msk.bf16.gmra.mrb[4].mxu0 %vm219_vm2, %v3443_v60 }
  0x7b   :  { %v2243_v26 = vsel %vm4445_vm9, %v2234_v57, %v2242_v27  ;;  %v2252_v4 = vrot.slane %v2251_v62, 4  ;;  %v2260_v37 = vor.u32 %v2259_v0, %v2256_v53  ;;  %v2268_v56 = vrot.slane %v2266_v63, 6 }
  0x7c   :  { %v3450_v13 = vcombine.low %v2225_v50, %v2243_v26  ;;  %v2274_v28 = vrot.slane %v2272_v12, 5  ;;  %v2277_v20 = vrot.slane %v2275_v5, 6  ;;  %v593_v21 = vrot.slane %v591_v55, 5 }
  0x7d   :  { %v2261_v36 = vsel %vm4445_vm9, %v2252_v4, %v2260_v37  ;;  %v2269_v15 = vor.u32 %v2268_v56, %v2265_v2  ;;  %v594_v11 = vshll.u32 %v4311_v59, 16  ;;  %v600_v8 = vshrl.u32 %v579_v1, 16  ;;  %v4485_v37 = vld [vmem:[#allocation5 + $0xd0] sm:$0xff]  }
  0x7e   :  { %3741 = vmatprep.mubr.msk.bf16.mxu0 %vm219_vm2, %v3450_v13  ;;  %v2278_v42 = vor.u32 %v2277_v20, %v2274_v28  ;;  %v603_v46 = vshll.u32 %v579_v1, 16  ;;  %v609_v60 = vshrl.u32 %v4316_v30, 16  ;;  %v612_v34 = vshll.u32 %v4316_v30, 16 }
  0x7f   :  { %v2270_v9 = vrot.slane %v2269_v15, 4  ;;  %v596_v6 = vrot.slane %v594_v11, 6  ;;  %v602_v17 = vrot.slane %v600_v8, 5  ;;  %v618_v31 = vshrl.u32 %v580_v58, 16  ;;  %v2205_v15 = vld [vmem:[#allocation2 + $0x3c] sm:$0x3] }
  0x80   :  { %v605_v51 = vrot.slane %v603_v46, 6  ;;  %v611_v19 = vrot.slane %v609_v60, 5  ;;  %v614_v47 = vrot.slane %v612_v34, 6  ;;  %v621_v32 = vshll.u32 %v580_v58, 16  ;;  %v2204_v58 = vld [vmem:[#allocation2 + $0x34] sm:$0x3] }
  0x81   :  { %v2279_v59 = vsel %vm4445_vm9, %v2270_v9, %v2278_v42  ;;  %v597_v54 = vor.u32 %v596_v6, %v593_v21  ;;  %v620_v49 = vrot.slane %v618_v31, 5  ;;  %v627_v23 = vshrl.u32 %v4334_v61, 16 }
  0x82   :  { %v3451_v14 = vcombine.low %v2261_v36, %v2279_v59  ;;  %v606_v43 = vor.u32 %v605_v51, %v602_v17  ;;  %v615_v45 = vor.u32 %v614_v47, %v611_v19  ;;  %v623_v30 = vrot.slane %v621_v32, 6 }
  0x83   :  { %v598_v50 = vrot.slane %v597_v54, 4  ;;  %v629_v27 = vrot.slane %v627_v23, 5  ;;  %v630_v53 = vshll.u32 %v4334_v61, 16  ;;  %v636_v24 = vshrl.u32 %v581_v41, 16  ;;  %v2206_v23 = vld [vmem:[#allocation2 + $0x44] sm:$0x3] }
  0x84   :  { %3742 = vmatmul.mubr.msk.bf16.vlgmr.msra.gmra.mrb[0].mxu0 %vm219_vm2, %v3451_v14  ;;  %v616_v57 = vrot.slane %v615_v45, 4  ;;  %v624_v62 = vor.u32 %v623_v30, %v620_v49  ;;  %v639_v0 = vshll.u32 %v581_v41, 16  ;;  %v645_v63 = vshrl.u32 %v4336_v44, 16 }
  0x85   :  { %v607_v1 = vsel %vm4445_vm9, %v598_v50, %v606_v43  ;;  %v632_v2 = vrot.slane %v630_v53, 6  ;;  %v638_v12 = vrot.slane %v636_v24, 5  ;;  %v648_v5 = vshll.u32 %v4336_v44, 16  ;;  %3750 = vmatpush3.bf16.msra.mxu0 %v4451_v7  ;;  %v3951_v43 = vld [vmem:[#allocation5 + $0x48] sm:$0xff]   ;;  %v2207_v53 = vld [vmem:[#allocation2 + $0x4c] sm:$0x3] }
  0x86   :  { %v625_v61 = vsel %vm4445_vm9, %v616_v57, %v624_v62  ;;  %v641_v55 = vrot.slane %v639_v0, 6  ;;  %v647_v26 = vrot.slane %v645_v63, 5  ;;  %v654_v4 = vshrl.u32 %v582_v18, 16  ;;  %3751 = vmatprep.subr.bf16.mxu0 %v3952_v52 }
  0x87   :  { %v3354_v56 = vcombine.low %v607_v1, %v625_v61  ;;  %v633_v13 = vor.u32 %v632_v2, %v629_v27  ;;  %v650_v28 = vrot.slane %v648_v5, 6  ;;  %v657_v20 = vshll.u32 %v582_v18, 16  ;;  %v4505_v61 = vld [vmem:[#allocation5 + $0x50] sm:$0xff]  }
  0x88   :  { %v642_v21 = vor.u32 %v641_v55, %v638_v12  ;;  %v656_v36 = vrot.slane %v654_v4, 5  ;;  %v2281_v44 = vshrl.u32 %v4341_v3, 16  ;;  %v2284_v7 = vshll.u32 %v4341_v3, 16 }
  0x89   :  { %3645 = vmatprep.mubr.msk.bf16.mxu1 %vm219_vm2, %v3354_v56  ;;  %v634_v11 = vrot.slane %v633_v13, 4  ;;  %v651_v8 = vor.u32 %v650_v28, %v647_v26  ;;  %v659_v42 = vrot.slane %v657_v20, 6  ;;  %v2290_v46 = vshrl.u32 %v2204_v58, 16  ;;  %3752 = vmatpush3.bf16.msra.mxu0 %v3952_v52 }
  0x8a   :  { %v2283_v60 = vrot.slane %v2281_v44, 5  ;;  %v2286_v34 = vrot.slane %v2284_v7, 6  ;;  %v2293_v41 = vshll.u32 %v2204_v58, 16  ;;  %v2299_v9 = vshrl.u32 %v4352_v10, 16  ;;  %3761 = vmatprep.subr.bf16.mxu0 %v4485_v37  ;;  %v583_v58 = vld [vmem:[#allocation2 + $0x24] sm:$0x3] }
  0x8b   :  { %v643_v6 = vsel %vm4445_vm9, %v634_v11, %v642_v21  ;;  %v652_v17 = vrot.slane %v651_v8, 4  ;;  %v660_v31 = vor.u32 %v659_v42, %v656_v36  ;;  %v2292_v3 = vrot.slane %v2290_v46, 5  ;;  %v584_v8 = vld [vmem:[#allocation2 + $0x2c] sm:$0x3] }
  0x8c   :  { %v2287_v51 = vor.u32 %v2286_v34, %v2283_v60  ;;  %v2295_v19 = vrot.slane %v2293_v41, 6  ;;  %v2301_v47 = vrot.slane %v2299_v9, 5  ;;  %v2302_v32 = vshll.u32 %v4352_v10, 16 }
  0x8d   :  { %v661_v59 = vsel %vm4445_vm9, %v652_v17, %v660_v31  ;;  %v2308_v54 = vshrl.u32 %v2205_v15, 16  ;;  %v2311_v49 = vshll.u32 %v2205_v15, 16  ;;  %v2317_v14 = vshrl.u32 %v4365_v22, 16 }
  0x8e   :  { %v3355_v45 = vcombine.low %v643_v6, %v661_v59  ;;  %v2288_v30 = vrot.slane %v2287_v51, 4  ;;  %v2296_v18 = vor.u32 %v2295_v19, %v2292_v3  ;;  %v2304_v52 = vrot.slane %v2302_v32, 6 }
  0x8f   :  { %v2310_v50 = vrot.slane %v2308_v54, 5  ;;  %v2313_v27 = vrot.slane %v2311_v49, 6  ;;  %v2319_v24 = vrot.slane %v2317_v14, 5  ;;  %v2320_v57 = vshll.u32 %v4365_v22, 16  ;;  %v3953_v49 = vld [vmem:[#allocation2 + $0x18] ss:$8 sps:$4 sm:$0xff]  }
  0x90   :  { %3646 = vmatmul.mubr.msk.bf16.vlgmr.msra.gmra.mrb[0].mxu1 %vm219_vm2, %v3355_v45  ;;  %v2297_v10 = vsel %vm4445_vm9, %v2288_v30, %v2296_v18  ;;  %v2305_v62 = vor.u32 %v2304_v52, %v2301_v47  ;;  %v2326_v0 = vshrl.u32 %v2206_v23, 16  ;;  %v2329_v63 = vshll.u32 %v2206_v23, 16  ;;  %v585_v47 = vld [vmem:[#allocation2 + $0x34] sm:$0x3]  ;;  %v586_v52 = vld [vmem:[#allocation2 + $0x3c] sm:$0x3] }
  0x91   :  { %3654 = vmatpush3.bf16.msra.mxu1 %v4436_v33  ;;  %v2314_v1 = vor.u32 %v2313_v27, %v2310_v50  ;;  %v2322_v2 = vrot.slane %v2320_v57, 6  ;;  %v2335_v12 = vshrl.u32 %v4367_v35, 16  ;;  %v2338_v5 = vshll.u32 %v4367_v35, 16 }
  0x92   :  { %v2306_v22 = vrot.slane %v2305_v62, 4  ;;  %v2328_v55 = vrot.slane %v2326_v0, 5  ;;  %v2331_v26 = vrot.slane %v2329_v63, 6  ;;  %v2344_v4 = vshrl.u32 %v2207_v53, 16  ;;  %3655 = vmatprep.subr.bf16.mxu1 %v3951_v43 }
  0x93   :  { %v2323_v56 = vor.u32 %v2322_v2, %v2319_v24  ;;  %v2337_v13 = vrot.slane %v2335_v12, 5  ;;  %v2340_v28 = vrot.slane %v2338_v5, 6  ;;  %v2347_v20 = vshll.u32 %v2207_v53, 16  ;;  %v4524_v2 = vld [vmem:[#allocation2 + $0x1c] sm:$0x1] }
  0x94   :  { %v2315_v33 = vsel %vm4445_vm9, %v2306_v22, %v2314_v1  ;;  %v2332_v21 = vor.u32 %v2331_v26, %v2328_v55  ;;  %v2346_v36 = vrot.slane %v2344_v4, 5  ;;  %v663_v15 = vshrl.u32 %v4379_v16, 16  ;;  %v3954_v22 = vld [vmem:[#allocation2 + $0x28] ss:$8 sps:$4 sm:$0xff]   ;;  %v2599_v55 = vld [vmem:[#allocation2 + $0x20] sm:$0xf] }
  0x95   :  { %v3452_v35 = vcombine.low %v2297_v10, %v2315_v33  ;;  %v2324_v44 = vrot.slane %v2323_v56, 4  ;;  %v2341_v7 = vor.u32 %v2340_v28, %v2337_v13  ;;  %v2349_v11 = vrot.slane %v2347_v20, 6  ;;  %3656 = vmatpush3.bf16.msra.mxu1 %v3951_v43  ;;  %v2597_v10 = vld [vmem:[#allocation2 + $0x18] sm:$0xf]  ;;  %v4529_v20 = vld [vmem:[#allocation2 + $0x24] sm:$0x1] }
  0x96   :  { %v665_v42 = vrot.slane %v663_v15, 5  ;;  %v666_v46 = vshll.u32 %v4379_v16, 16  ;;  %v672_v60 = vshrl.u32 %v583_v58, 16  ;;  %v675_v34 = vshll.u32 %v583_v58, 16  ;;  %3665 = vmatprep.subr.bf16.mxu1 %v4505_v61  ;;  %v3959_v28 = vld [vmem:[#allocation2 + $0x38] ss:$8 sps:$4 sm:$0xff]  }
  0x97   :  { %3745 = vmatprep.mubr.msk.bf16.mxu0 %vm219_vm2, %v3452_v35  ;;  %v2333_v41 = vsel %vm4445_vm9, %v2324_v44, %v2332_v21  ;;  %v2342_v9 = vrot.slane %v2341_v7, 4  ;;  %v2350_v6 = vor.u32 %v2349_v11, %v2346_v36  ;;  %v681_v17 = vshrl.u32 %v4381_v38, 16  ;;  %v2601_v35 = vld [vmem:[#allocation2 + $0x28] sm:$0xf] }
  0x98   :  { %v668_v31 = vrot.slane %v666_v46, 6  ;;  %v674_v3 = vrot.slane %v672_v60, 5  ;;  %v677_v51 = vrot.slane %v675_v34, 6  ;;  %v684_v19 = vshll.u32 %v4381_v38, 16 }
  0x99   :  { %v2351_v16 = vsel %vm4445_vm9, %v2342_v9, %v2350_v6  ;;  %v683_v32 = vrot.slane %v681_v17, 5  ;;  %v690_v59 = vshrl.u32 %v584_v8, 16  ;;  %v693_v54 = vshll.u32 %v584_v8, 16 }
  0x9a   :  { %v3453_v23 = vcombine.low %v2333_v41, %v2351_v16  ;;  %v669_v14 = vor.u32 %v668_v31, %v665_v42  ;;  %v678_v43 = vor.u32 %v677_v51, %v674_v3  ;;  %v686_v45 = vrot.slane %v684_v19, 6  ;;  %v3963_v42 = vld [vmem:[#allocation5 + $0xd8] sm:$0xff]   ;;  %v4537_v31 = vld [vmem:[#allocation2 + $0x2c] sm:$0x1] }
  0x9b   :  { %v692_v30 = vrot.slane %v690_v59, 5  ;;  %v695_v18 = vrot.slane %v693_v54, 6  ;;  %v699_v50 = vshrl.u32 %v4400_v25, 16  ;;  %v702_v27 = vshll.u32 %v4400_v25, 16  ;;  %v2603_v16 = vld [vmem:[#allocation2 + $0x30] sm:$0xf] }
  0x9c   :  { %3746 = vmatmul.mubr.msk.bf16.gmra.mrb[4].mxu0 %vm219_vm2, %v3453_v23  ;;  %v670_v38 = vrot.slane %v669_v14, 4  ;;  %v687_v53 = vor.u32 %v686_v45, %v683_v32  ;;  %v708_v24 = vshrl.u32 %v585_v47, 16  ;;  %v711_v57 = vshll.u32 %v585_v47, 16  ;;  %v3955_v59 = vld [vmem:[#allocation2 + $0x8] ss:$8 sps:$4 sm:$0xff]  }
  0x9d   :  { %v696_v62 = vor.u32 %v695_v18, %v692_v30  ;;  %v701_v0 = vrot.slane %v699_v50, 5  ;;  %v704_v63 = vrot.slane %v702_v27, 6  ;;  %v717_v1 = vshrl.u32 %v4410_v48, 16  ;;  %3753 = vmatprep.mubr.msk.bf16.mxu0 %vm219_vm2, %v3953_v49  ;;  %v4543_v45 = vld [vmem:[#allocation2 + $0x34] sm:$0x1] }
  0x9e   :  { %v679_v12 = vsel %vm4445_vm9, %v670_v38, %v678_v43  ;;  %v688_v25 = vrot.slane %v687_v53, 4  ;;  %v710_v5 = vrot.slane %v708_v24, 5  ;;  %v713_v58 = vrot.slane %v711_v57, 6  ;;  %v3960_v27 = vld [vmem:[#allocation2 + $0x48] ss:$8 sps:$4 sm:$0xff]  }
  0x9f   :  { %v705_v26 = vor.u32 %v704_v63, %v701_v0  ;;  %v719_v4 = vrot.slane %v717_v1, 5  ;;  %v720_v56 = vshll.u32 %v4410_v48, 16  ;;  %v726_v13 = vshrl.u32 %v586_v52, 16  ;;  %v979_v24 = vld [vmem:[#allocation2 + $0x8] sm:$0xf] }
  0xa0   :  { %v697_v33 = vsel %vm4445_vm9, %v688_v25, %v696_v62  ;;  %v714_v21 = vor.u32 %v713_v58, %v710_v5  ;;  %v729_v36 = vshll.u32 %v586_v52, 16  ;;  %v2614_v15 = vshrl.u32 %v2597_v10, 16  ;;  %v4546_v52 = vld [vmem:[#allocation5 + $0xe0] sm:$0xff]   ;;  %v4550_v63 = vld [vmem:[#allocation2 + $0xc] sm:$0x1] }
  0xa1   :  { %v3356_v44 = vcombine.low %v679_v12, %v697_v33  ;;  %v706_v7 = vrot.slane %v705_v26, 4  ;;  %v722_v11 = vrot.slane %v720_v56, 6  ;;  %v728_v8 = vrot.slane %v726_v13, 5  ;;  %v4556_v26 = vld [vmem:[#allocation2 + $0x14] sm:$0x1] }
  0xa2   :  { %v731_v46 = vrot.slane %v729_v36, 6  ;;  %v2616_v60 = vrot.slane %v2614_v15, 4  ;;  %v2617_v34 = vshll.u32 %v2597_v10, 16  ;;  %v2623_v48 = vshll.u32 %v4524_v2, 16  ;;  %v983_v36 = vld [vmem:[#allocation2 + $0x18] sm:$0xf] }
  0xa3   :  { %3649 = vmatprep.mubr.msk.bf16.mxu1 %vm219_vm2, %v3356_v44  ;;  %v715_v41 = vsel %vm4445_vm9, %v706_v7, %v714_v21  ;;  %v723_v9 = vor.u32 %v722_v11, %v719_v4  ;;  %v2628_v6 = vshrl.u32 %v2599_v55, 16  ;;  %v2631_v17 = vshll.u32 %v2599_v55, 16  ;;  %v981_v55 = vld [vmem:[#allocation2 + $0x10] sm:$0xf]  ;;  %v3958_v15 = vld [vmem:[#allocation2 + $0x18] ss:$8 sps:$4 sm:$0xff]  }
  0xa4   :  { %v732_v3 = vor.u32 %v731_v46, %v728_v8  ;;  %3754 = vmatmul.mubr.msk.bf16.vlgmr.msra.gmra.mrb[0].mxu0 %vm219_vm2, %v3954_v22  ;;  %v2619_v51 = vrot.slane %v2617_v34, 5  ;;  %v2625_v19 = vrot.slane %v2623_v48, 5  ;;  %v2637_v47 = vshll.u32 %v4529_v20, 16  ;;  %v3961_v8 = vld [vmem:[#allocation2 + $0x28] ss:$8 sps:$4 sm:$0xff]  }
  0xa5   :  { %v724_v32 = vrot.slane %v723_v9, 4  ;;  %3762 = vmatpush3.bf16.msra.mxu0 %v4485_v37  ;;  %3757 = vmatprep.mubr.msk.bf16.mxu0 %vm219_vm2, %v3959_v28  ;;  %v2630_v54 = vrot.slane %v2628_v6, 4  ;;  %v2633_v49 = vrot.slane %v2631_v17, 5  ;;  %v2642_v23 = vshrl.u32 %v2601_v35, 16  ;;  %v4564_v48 = vld [vmem:[#allocation2 + $0x1c] sm:$0x1] }
  0xa6   :  { %3763 = vmatprep.subr.bf16.mxu0 %v3963_v42  ;;  %v2620_v14 = vor.u32 %v2619_v51, %v2616_v60  ;;  %v2639_v43 = vrot.slane %v2637_v47, 5  ;;  %v2645_v30 = vshll.u32 %v2601_v35, 16  ;;  %v2651_v18 = vshll.u32 %v4537_v31, 16  ;;  %v4570_v51 = vld [vmem:[#allocation2 + $0x24] sm:$0x1] }
  0xa7   :  { %v733_v50 = vsel %vm4445_vm9, %v724_v32, %v732_v3  ;;  %v2634_v37 = vor.u32 %v2633_v49, %v2630_v54  ;;  %v2644_v38 = vrot.slane %v2642_v23, 4  ;;  %v2656_v53 = vshrl.u32 %v2603_v16, 16  ;;  %v985_v3 = vld [vmem:[#allocation2 + $0x20] sm:$0xf]  ;;  %v2605_v54 = vld [vmem:[#allocation2 + $0x38] sm:$0xf] }
  0xa8   :  { %v3357_v57 = vcombine.low %v715_v41, %v733_v50  ;;  %v2621_v10 = vrot.slane %v2620_v14, 4  ;;  %v2647_v62 = vrot.slane %v2645_v30, 5  ;;  %v2653_v0 = vrot.slane %v2651_v18, 5  ;;  %v3962_v41 = vld [vmem:[#allocation5 + $0x58] sm:$0xff]   ;;  %v4572_v49 = vld [vmem:[#allocation2 + $0x3c] sm:$0x1] }
  0xa9   :  { %3764 = vmatpush3.bf16.msra.mxu0 %v3963_v42  ;;  %v2635_v1 = vrot.slane %v2634_v37, 4  ;;  %v2658_v12 = vrot.slane %v2656_v53, 4  ;;  %v2659_v25 = vshll.u32 %v2603_v16, 16  ;;  %v2665_v5 = vshll.u32 %v4543_v45, 16  ;;  %v3968_v18 = vld [vmem:[#allocation5 + $0xe8] sm:$0xff]  }
  0xaa   :  { %3650 = vmatmul.mubr.msk.bf16.gmra.mrb[4].mxu1 %vm219_vm2, %v3357_v57  ;;  %v2626_v58 = vsel %vm4164_vm3, %v2621_v10, %v2625_v19  ;;  %v2648_v22 = vor.u32 %v2647_v62, %v2644_v38  ;;  %v996_v4 = vshrl.u32 %v979_v24, 16  ;;  %v999_v56 = vshll.u32 %v979_v24, 16  ;;  %3773 = vmatprep.subr.bf16.mxu0 %v4546_v52  ;;  %v2607_v62 = vld [vmem:[#allocation2 + $0x40] sm:$0xf] }
  0xab   :  { %3657 = vmatprep.mubr.msk.bf16.mxu1 %vm219_vm2, %v3955_v59  ;;  %v2640_v13 = vsel %vm4164_vm3, %v2635_v1, %v2639_v43  ;;  %v2661_v28 = vrot.slane %v2659_v25, 5  ;;  %v2667_v33 = vrot.slane %v2665_v5, 5  ;;  %v1005_v21 = vshll.u32 %v4550_v63, 16  ;;  %v4582_v1 = vld [vmem:[#allocation5 + $0x60] sm:$0xff]  }
  0xac   :  { %3758 = vmatmul.mubr.msk.bf16.gmra.mrb[4].mxu0 %vm219_vm2, %v3960_v27  ;;  %v3470_v35 = vcombine.low %v2626_v58, %v2640_v13  ;;  %v2649_v44 = vrot.slane %v2648_v22, 4  ;;  %v998_v7 = vrot.slane %v996_v4, 4  ;;  %v1001_v11 = vrot.slane %v999_v56, 5  ;;  %v3964_v58 = vld [vmem:[#allocation2 + $0x38] ss:$8 sps:$4 sm:$0xff]  }
  0xad   :  { %v2662_v42 = vor.u32 %v2661_v28, %v2658_v12  ;;  %v1007_v46 = vrot.slane %v1005_v21, 5  ;;  %v1010_v60 = vshrl.u32 %v981_v55, 16  ;;  %v1013_v34 = vshll.u32 %v981_v55, 16  ;;  %v4586_v55 = vld [vmem:[#allocation2 + $0x44] sm:$0x1] }
  0xae   :  { %3765 = vmatprep.mubr.msk.bf16.mxu0 %vm219_vm2, %v3470_v35  ;;  %v2654_v9 = vsel %vm4164_vm3, %v2649_v44, %v2653_v0  ;;  %v1002_v6 = vor.u32 %v1001_v11, %v998_v7  ;;  %v1019_v17 = vshll.u32 %v4556_v26, 16  ;;  %v1024_v19 = vshrl.u32 %v983_v36, 16 }
  0xaf   :  { %v2663_v47 = vrot.slane %v2662_v42, 4  ;;  %v1012_v16 = vrot.slane %v1010_v60, 4  ;;  %v1015_v32 = vrot.slane %v1013_v34, 5  ;;  %v1027_v59 = vshll.u32 %v983_v36, 16  ;;  %v2609_v36 = vld [vmem:[#allocation2 + $0x48] sm:$0xf] }
  0xb0   :  { %v1003_v23 = vrot.slane %v1002_v6, 4  ;;  %v1021_v14 = vrot.slane %v1019_v17, 5  ;;  %v1026_v43 = vrot.slane %v1024_v19, 4  ;;  %v1033_v30 = vshll.u32 %v4564_v48, 16  ;;  %v2611_v42 = vld [vmem:[#allocation2 + $0x50] sm:$0xf] }
  0xb1   :  { %v2668_v50 = vsel %vm4164_vm3, %v2663_v47, %v2667_v33  ;;  %v1016_v27 = vor.u32 %v1015_v32, %v1012_v16  ;;  %v1029_v37 = vrot.slane %v1027_v59, 5  ;;  %v1038_v38 = vshrl.u32 %v985_v3, 16  ;;  %v987_v47 = vld [vmem:[#allocation2 + $0x28] sm:$0xf] }
  0xb2   :  { %3658 = vmatmul.mubr.msk.bf16.vlgmr.msra.gmra.mrb[0].mxu1 %vm219_vm2, %v3958_v15  ;;  %v3471_v53 = vcombine.low %v2654_v9, %v2668_v50  ;;  %v1008_v24 = vsel %vm4164_vm3, %v1003_v23, %v1007_v46  ;;  %v1035_v57 = vrot.slane %v1033_v30, 5  ;;  %v1041_v10 = vshll.u32 %v985_v3, 16  ;;  %v4592_v15 = vld [vmem:[#allocation5 + $0xf0] sm:$0xff]   ;;  %v989_v50 = vld [vmem:[#allocation2 + $0x30] sm:$0xf] }
  0xb3   :  { %3666 = vmatpush3.bf16.msra.mxu1 %v4505_v61  ;;  %3661 = vmatprep.mubr.msk.bf16.mxu1 %vm219_vm2, %v3961_v8  ;;  %v1017_v0 = vrot.slane %v1016_v27, 4  ;;  %v1030_v12 = vor.u32 %v1029_v37, %v1026_v43  ;;  %v1040_v25 = vrot.slane %v1038_v38, 4  ;;  %v1047_v5 = vshll.u32 %v4570_v51, 16  ;;  %v4594_v8 = vld [vmem:[#allocation2 + $0x4c] sm:$0x1] }
  0xb4   :  { %3667 = vmatprep.subr.bf16.mxu1 %v3962_v41  ;;  %3766 = vmatmul.mubr.msk.bf16.vlgmr.msra.gmra.mrb[0].mxu0 %vm219_vm2, %v3471_v53  ;;  %v1043_v22 = vrot.slane %v1041_v10, 5  ;;  %v2670_v4 = vshrl.u32 %v2605_v54, 16  ;;  %v2673_v56 = vshll.u32 %v2605_v54, 16  ;;  %v2679_v61 = vshll.u32 %v4572_v49, 16  ;;  %v4603_v54 = vld [vmem:[#allocation2 + $0x2c] sm:$0x1] }
  0xb5   :  { %v1022_v13 = vsel %vm4164_vm3, %v1017_v0, %v1021_v14  ;;  %v1031_v28 = vrot.slane %v1030_v12, 4  ;;  %v1049_v33 = vrot.slane %v1047_v5, 5  ;;  %3774 = vmatpush3.bf16.msra.mxu0 %v4546_v52  ;;  %v2684_v21 = vshrl.u32 %v2607_v62, 16  ;;  %v4598_v52 = vld [vmem:[#allocation2 + $0x54] sm:$0x1] }
  0xb6   :  { %v3374_v35 = vcombine.low %v1008_v24, %v1022_v13  ;;  %v1044_v44 = vor.u32 %v1043_v22, %v1040_v25  ;;  %v2672_v7 = vrot.slane %v2670_v4, 4  ;;  %v2675_v11 = vrot.slane %v2673_v56, 5  ;;  %3775 = vmatprep.subr.bf16.mxu0 %v3968_v18 }
  0xb7   :  { %3668 = vmatpush3.bf16.msra.mxu1 %v3962_v41  ;;  %v1036_v46 = vsel %vm4164_vm3, %v1031_v28, %v1035_v57  ;;  %v2681_v60 = vrot.slane %v2679_v61, 5  ;;  %v2686_v34 = vrot.slane %v2684_v21, 4  ;;  %v2687_v9 = vshll.u32 %v2607_v62, 16  ;;  %v4613_v62 = vld [vmem:[#allocation2 + $0x34] sm:$0x1] }
  0xb8   :  { %3677 = vmatprep.subr.bf16.mxu1 %v4582_v1  ;;  %v1045_v6 = vrot.slane %v1044_v44, 4  ;;  %v2676_v17 = vor.u32 %v2675_v11, %v2672_v7  ;;  %v2693_v3 = vshll.u32 %v4586_v55, 16  ;;  %v2698_v19 = vshrl.u32 %v2609_v36, 16  ;;  %v991_v61 = vld [vmem:[#allocation2 + $0x38] sm:$0xf] }
  0xb9   :  { %v2689_v16 = vrot.slane %v2687_v9, 5  ;;  %v2701_v32 = vshll.u32 %v2609_v36, 16  ;;  %v2707_v41 = vshll.u32 %v4594_v8, 16  ;;  %v2712_v59 = vshrl.u32 %v2611_v42, 16  ;;  %3776 = vmatpush3.bf16.msra.mxu0 %v3968_v18  ;;  %v4618_v36 = vld [vmem:[#allocation2 + $0x3c] sm:$0x1] }
  0xba   :  { %3662 = vmatmul.mubr.msk.bf16.gmra.mrb[4].mxu1 %vm219_vm2, %v3964_v58  ;;  %v1050_v23 = vsel %vm4164_vm3, %v1045_v6, %v1049_v33  ;;  %v2677_v14 = vrot.slane %v2676_v17, 4  ;;  %v2695_v43 = vrot.slane %v2693_v3, 5  ;;  %v2700_v30 = vrot.slane %v2698_v19, 4  ;;  %3785 = vmatprep.subr.bf16.mxu0 %v4592_v15  ;;  %v4623_v17 = vld [vmem:[#allocation2 + $0x44] sm:$0x1] }
  0xbb   :  { %3669 = vmatprep.mubr.msk.bf16.mxu1 %vm219_vm2, %v3374_v35  ;;  %v3375_v27 = vcombine.low %v1036_v46, %v1050_v23  ;;  %v2690_v37 = vor.u32 %v2689_v16, %v2686_v34  ;;  %v2703_v38 = vrot.slane %v2701_v32, 5  ;;  %v2709_v53 = vrot.slane %v2707_v41, 5  ;;  %v993_v46 = vld [vmem:[#allocation2 + $0x40] sm:$0xf]  ;;  %v4625_v3 = vld [vmem:[#allocation2 + $0x18] sm:$0xe] }
  0xbc   :  { %v2682_v18 = vsel %vm4164_vm3, %v2677_v14, %v2681_v60  ;;  %v2714_v24 = vrot.slane %v2712_v59, 4  ;;  %v2715_v57 = vshll.u32 %v2611_v42, 16  ;;  %v2721_v10 = vshll.u32 %v4598_v52, 16  ;;  %v3967_v42 = vld [vmem:[#allocation5 + $0x68] sm:$0xff]  }
  0xbd   :  { %v2691_v0 = vrot.slane %v2690_v37, 4  ;;  %v2704_v12 = vor.u32 %v2703_v38, %v2700_v30  ;;  %v1052_v25 = vshrl.u32 %v987_v47, 16  ;;  %v1055_v5 = vshll.u32 %v987_v47, 16  ;;  %v4630_v41 = vld [vmem:[#allocation2 + $0x20] sm:$0xe] }
  0xbe   :  { %v2717_v58 = vrot.slane %v2715_v57, 5  ;;  %v2723_v22 = vrot.slane %v2721_v10, 5  ;;  %v1061_v4 = vshll.u32 %v4603_v54, 16  ;;  %v1066_v56 = vshrl.u32 %v989_v50, 16  ;;  %v4633_v30 = vld [vmem:[#allocation2 + $0x28] sm:$0xe] }
  0xbf   :  { %v2696_v13 = vsel %vm4164_vm3, %v2691_v0, %v2695_v43  ;;  %v2705_v28 = vrot.slane %v2704_v12, 4  ;;  %v1054_v33 = vrot.slane %v1052_v25, 4  ;;  %v1057_v21 = vrot.slane %v1055_v5, 5 }
  0xc0   :  { %v3472_v35 = vcombine.low %v2682_v18, %v2696_v13  ;;  %v2718_v44 = vor.u32 %v2717_v58, %v2714_v24  ;;  %v1063_v7 = vrot.slane %v1061_v4, 5  ;;  %v1068_v11 = vrot.slane %v1066_v56, 4  ;;  %v4647_v56 = vld [vmem:[#allocation2 + $0x30] sm:$0xe] }
  0xc1   :  { %v2710_v60 = vsel %vm4164_vm3, %v2705_v28, %v2709_v53  ;;  %v1058_v34 = vor.u32 %v1057_v21, %v1054_v33  ;;  %v1069_v9 = vshll.u32 %v989_v50, 16  ;;  %v1075_v6 = vshll.u32 %v4613_v62, 16  ;;  %v4637_v53 = vld [vmem:[#allocation5 + $0x70] sm:$0xff]  }
  0xc2   :  { %3670 = vmatmul.mubr.msk.bf16.vlgmr.msra.gmra.mrb[0].mxu1 %vm219_vm2, %v3375_v27  ;;  %3769 = vmatprep.mubr.msk.bf16.mxu0 %vm219_vm2, %v3472_v35  ;;  %v2719_v19 = vrot.slane %v2718_v44, 4  ;;  %v1080_v47 = vshrl.u32 %v991_v61, 16  ;;  %v1083_v16 = vshll.u32 %v991_v61, 16  ;;  %v1089_v32 = vshll.u32 %v4618_v36, 16  ;;  %v4650_v21 = vld [vmem:[#allocation2 + $0x8] sm:$0xe] }
  0xc3   :  { %3678 = vmatpush3.bf16.msra.mxu1 %v4582_v1  ;;  %v1059_v59 = vrot.slane %v1058_v34, 4  ;;  %v1071_v23 = vrot.slane %v1069_v9, 5  ;;  %v1077_v14 = vrot.slane %v1075_v6, 5  ;;  %v1094_v43 = vshrl.u32 %v993_v46, 16  ;;  %v4664_v34 = vld [vmem:[#allocation2 + $0x18] sm:$0xe] }
  0xc4   :  { %v2724_v50 = vsel %vm4164_vm3, %v2719_v19, %v2723_v22  ;;  %3679 = vmatprep.subr.bf16.mxu1 %v3967_v42  ;;  %v1082_v27 = vrot.slane %v1080_v47, 4  ;;  %v1085_v37 = vrot.slane %v1083_v16, 5  ;;  %v1091_v38 = vrot.slane %v1089_v32, 5  ;;  %v4666_v9 = vld [vmem:[#allocation2 + $0x20] sm:$0xe] }
  0xc5   :  { %v3473_v18 = vcombine.low %v2710_v60, %v2724_v50  ;;  %v1064_v24 = vsel %vm4164_vm3, %v1059_v59, %v1063_v7  ;;  %v1072_v1 = vor.u32 %v1071_v23, %v1068_v11  ;;  %v1096_v57 = vrot.slane %v1094_v43, 4  ;;  %v4660_v7 = vld [vmem:[#allocation2 + $0x10] sm:$0xe] }
  0xc6   :  { %v1086_v10 = vor.u32 %v1085_v37, %v1082_v27  ;;  %v1097_v0 = vshll.u32 %v993_v46, 16  ;;  %v1103_v12 = vshll.u32 %v4623_v17, 16  ;;  %v3480_v25 = vrot.slane %v4625_v3, 9  ;;  %v4685_v37 = vld [vmem:[#allocation2 + $0x40] sm:$0xe] }
  0xc7   :  { %3770 = vmatmul.mubr.msk.bf16.gmra.mrb[4].mxu0 %vm219_vm2, %v3473_v18  ;;  %v1073_v5 = vrot.slane %v1072_v1, 4  ;;  %3680 = vmatpush3.bf16.msra.mxu1 %v3967_v42  ;;  %v2865_v58 = vrot.slane %v4524_v2, 5  ;;  %v3481_v22 = vrot.slane %v4630_v41, 9  ;;  %v2869_v4 = vrot.slane %v4529_v20, 5  ;;  %v4695_v1 = vld [vmem:[#allocation2 + $0x50] sm:$0xe] }
  0xc8   :  { %v1087_v61 = vrot.slane %v1086_v10, 4  ;;  %v1099_v13 = vrot.slane %v1097_v0, 5  ;;  %v1105_v28 = vrot.slane %v1103_v12, 5  ;;  %v3482_v33 = vrot.slane %v4633_v30, 9  ;;  %3689 = vmatprep.subr.bf16.mxu1 %v4637_v53  ;;  %v4700_v12 = vld [vmem:[#allocation2 + $0x28] sm:$0xe] }
  0xc9   :  { %v1078_v35 = vsel %vm4164_vm3, %v1073_v5, %v1077_v14  ;;  %v2866_v2 = vsel %vm4305_vm6, %v3480_v25, %v2865_v58  ;;  %v2870_v20 = vsel %vm4305_vm6, %v3481_v22, %v2869_v4  ;;  %v2873_v44 = vrot.slane %v4537_v31, 5  ;;  %v4678_v14 = vld [vmem:[#allocation2 + $0x38] sm:$0xe]  ;;  %v4707_v4 = vld [vmem:[#allocation2 + $0x30] sm:$0xe] }
  0xca   :  { %v3376_v11 = vcombine.low %v1064_v24, %v1078_v35  ;;  %v1092_v42 = vsel %vm4164_vm3, %v1087_v61, %v1091_v38  ;;  %v1100_v46 = vor.u32 %v1099_v13, %v1096_v57  ;;  %v3488_v60 = vcombine.low %v2866_v2, %v2870_v20  ;;  %v4693_v24 = vld [vmem:[#allocation2 + $0x48] sm:$0xe]  ;;  %v3972_v57 = vld [vmem:[#allocation5 + $0xf8] sm:$0xff]  }
  0xcb   :  { %v2874_v6 = vsel %vm4305_vm6, %v3482_v33, %v2873_v44  ;;  %v3483_v19 = vrot.slane %v4647_v56, 9  ;;  %v2877_v47 = vrot.slane %v4543_v45, 5  ;;  %v3384_v31 = vrot.slane %v4650_v21, 9 }
  0xcc   :  { %3673 = vmatprep.mubr.msk.bf16.mxu1 %vm219_vm2, %v3376_v11  ;;  %v1101_v16 = vrot.slane %v1100_v46, 4  ;;  %3777 = vmatprep.mubr.msk.bf16.mxu0 %vm219_vm2, %v3488_v60  ;;  %v1247_v32 = vrot.slane %v4550_v63, 5  ;;  %v3385_v59 = vrot.slane %v4660_v7, 9  ;;  %v1251_v23 = vrot.slane %v4556_v26, 5 }
  0xcd   :  { %v2878_v43 = vsel %vm4305_vm6, %v3483_v19, %v2877_v47  ;;  %v3386_v45 = vrot.slane %v4664_v34, 9  ;;  %v1255_v50 = vrot.slane %v4564_v48, 5  ;;  %v3387_v27 = vrot.slane %v4666_v9, 9 }
  0xce   :  { %v1106_v63 = vsel %vm4164_vm3, %v1101_v16, %v1105_v28  ;;  %v3489_v38 = vcombine.low %v2874_v6, %v2878_v43  ;;  %v1248_v26 = vsel %vm4305_vm6, %v3384_v31, %v1247_v32  ;;  %v1252_v18 = vsel %vm4305_vm6, %v3385_v59, %v1251_v23  ;;  %v3009_v6 = vld [vmem:[#allocation2 + $0x1c] sm:$0x3]  ;;  %v3971_v43 = vld [vmem:[#allocation5 + $0x78] sm:$0xff]  }
  0xcf   :  { %v3377_v48 = vcombine.low %v1092_v42, %v1106_v63  ;;  %v3392_v10 = vcombine.low %v1248_v26, %v1252_v18  ;;  %v1256_v0 = vsel %vm4305_vm6, %v3386_v45, %v1255_v50  ;;  %v1259_v29 = vrot.slane %v4570_v51, 5  ;;  %v3010_v50 = vld [vmem:[#allocation2 + $0x24] sm:$0x3] }
  0xd0   :  { %3778 = vmatmul.mubr.msk.bf16.vlgmr.msra.gmra.mrb[0].mxu0 %vm219_vm2, %v3489_v38  ;;  %v3484_v25 = vrot.slane %v4678_v14, 9  ;;  %v2881_v5 = vrot.slane %v4572_v49, 5  ;;  %v3485_v58 = vrot.slane %v4685_v37, 9  ;;  %v2885_v22 = vrot.slane %v4586_v55, 5  ;;  %v4716_v49 = vld [vmem:[#allocation2 + $0x38] sm:$0xe] }
  0xd1   :  { %3674 = vmatmul.mubr.msk.bf16.gmra.mrb[4].mxu1 %vm219_vm2, %v3377_v48  ;;  %v1260_v61 = vsel %vm4305_vm6, %v3387_v27, %v1259_v29  ;;  %3786 = vmatpush3.bf16.msra.mxu0 %v4592_v15  ;;  %v3486_v51 = vrot.slane %v4693_v24, 9  ;;  %v2889_v13 = vrot.slane %v4594_v8, 5  ;;  %v3487_v28 = vrot.slane %v4695_v1, 9  ;;  %v4724_v15 = vld [vmem:[#allocation2 + $0x40] sm:$0xe] }
  0xd2   :  { %3681 = vmatprep.mubr.msk.bf16.mxu1 %vm219_vm2, %v3392_v10  ;;  %v3393_v55 = vcombine.low %v1256_v0, %v1260_v61  ;;  %v2882_v33 = vsel %vm4305_vm6, %v3484_v25, %v2881_v5  ;;  %v2886_v35 = vsel %vm4305_vm6, %v3485_v58, %v2885_v22  ;;  %v2893_v2 = vrot.slane %v4598_v52, 5  ;;  %3787 = vmatprep.subr.bf16.mxu0 %v3972_v57  ;;  %v3011_v10 = vld [vmem:[#allocation2 + $0x2c] sm:$0x3] }
  0xd3   :  { %v3490_v20 = vcombine.low %v2882_v33, %v2886_v35  ;;  %v2890_v8 = vsel %vm4305_vm6, %v3486_v51, %v2889_v13  ;;  %v3388_v44 = vrot.slane %v4700_v12, 9  ;;  %v1263_v11 = vrot.slane %v4603_v54, 5  ;;  %v3012_v33 = vld [vmem:[#allocation2 + $0x34] sm:$0x3] }
  0xd4   :  { %v2894_v42 = vsel %vm4305_vm6, %v3487_v28, %v2893_v2  ;;  %v3389_v46 = vrot.slane %v4707_v4, 9  ;;  %v1267_v60 = vrot.slane %v4613_v62, 5  ;;  %v3390_v52 = vrot.slane %v4716_v49, 9 }
  0xd5   :  { %3781 = vmatprep.mubr.msk.bf16.mxu0 %vm219_vm2, %v3490_v20  ;;  %v3491_v19 = vcombine.low %v2890_v8, %v2894_v42  ;;  %v1264_v47 = vsel %vm4305_vm6, %v3388_v44, %v1263_v11  ;;  %v1271_v31 = vrot.slane %v4618_v36, 5  ;;  %v3391_v54 = vrot.slane %v4724_v15, 9  ;;  %3788 = vmatpush3.bf16.msra.mxu0 %v3972_v57 }
  0xd6   :  { %v1268_v16 = vsel %vm4305_vm6, %v3389_v46, %v1267_v60  ;;  %v1275_v32 = vrot.slane %v4623_v17, 5  ;;  %v3018_v62 = vshrl.u32 %v4625_v3, 16  ;;  %v3021_v59 = vshll.u32 %v4625_v3, 16 }
  0xd7   :  { %v3394_v23 = vcombine.low %v1264_v47, %v1268_v16  ;;  %v1272_v45 = vsel %vm4305_vm6, %v3390_v52, %v1271_v31  ;;  %v3027_v27 = vshrl.u32 %v3009_v6, 16  ;;  %v3030_v36 = vshll.u32 %v3009_v6, 16  ;;  %v1391_v47 = vld [vmem:[#allocation2 + $0xc] sm:$0x3] }
  0xd8   :  { %3782 = vmatmul.mubr.msk.bf16.gmra.mrb[4].mxu0 %vm219_vm2, %v3491_v19  ;;  %v1276_v63 = vsel %vm4305_vm6, %v3391_v54, %v1275_v32  ;;  %v3020_v38 = vrot.slane %v3018_v62, 5  ;;  %v3023_v26 = vrot.slane %v3021_v59, 6  ;;  %v3036_v17 = vshrl.u32 %v4630_v41, 16 }
  0xd9   :  { %3682 = vmatmul.mubr.msk.bf16.vlgmr.msra.gmra.mrb[0].mxu1 %vm219_vm2, %v3393_v55  ;;  %v3395_v3 = vcombine.low %v1272_v45, %v1276_v63  ;;  %v3029_v18 = vrot.slane %v3027_v27, 5  ;;  %v3032_v57 = vrot.slane %v3030_v36, 6  ;;  %v3039_v48 = vshll.u32 %v4630_v41, 16  ;;  %v1392_v45 = vld [vmem:[#allocation2 + $0x14] sm:$0x3] }
  0xda   :  { %3690 = vmatpush3.bf16.msra.mxu1 %v4637_v53  ;;  %3685 = vmatprep.mubr.msk.bf16.mxu1 %vm219_vm2, %v3394_v23  ;;  %v3024_v0 = vor.u32 %v3023_v26, %v3020_v38  ;;  %v3038_v29 = vrot.slane %v3036_v17, 5  ;;  %v3045_v39 = vshrl.u32 %v3010_v50, 16  ;;  %v3048_v25 = vshll.u32 %v3010_v50, 16 }
  0xdb   :  { %3691 = vmatprep.subr.bf16.mxu1 %v3971_v43  ;;  %v3033_v5 = vor.u32 %v3032_v57, %v3029_v18  ;;  %v3041_v58 = vrot.slane %v3039_v48, 6  ;;  %v3054_v22 = vshrl.u32 %v4633_v30, 16  ;;  %v3057_v61 = vshll.u32 %v4633_v30, 16 }
  0xdc   :  { %v3025_v51 = vrot.slane %v3024_v0, 4  ;;  %v3047_v13 = vrot.slane %v3045_v39, 5  ;;  %v3050_v28 = vrot.slane %v3048_v25, 6  ;;  %v3063_v41 = vshrl.u32 %v3011_v10, 16 }
  0xdd   :  { %v3042_v55 = vor.u32 %v3041_v58, %v3038_v29  ;;  %v3056_v53 = vrot.slane %v3054_v22, 5  ;;  %v3059_v35 = vrot.slane %v3057_v61, 6  ;;  %v3066_v2 = vshll.u32 %v3011_v10, 16 }
  0xde   :  { %3692 = vmatpush3.bf16.msra.mxu1 %v3971_v43  ;;  %v3034_v20 = vsel %vm4445_vm9, %v3025_v51, %v3033_v5  ;;  %v3051_v8 = vor.u32 %v3050_v28, %v3047_v13  ;;  %v3065_v44 = vrot.slane %v3063_v41, 5  ;;  %v3072_v11 = vshrl.u32 %v4647_v56, 16  ;;  %v1393_v5 = vld [vmem:[#allocation2 + $0x1c] sm:$0x3] }
  0xdf   :  { %v3043_v42 = vrot.slane %v3042_v55, 4  ;;  %v3060_v46 = vor.u32 %v3059_v35, %v3056_v53  ;;  %v3068_v30 = vrot.slane %v3066_v2, 6  ;;  %v3075_v60 = vshll.u32 %v4647_v56, 16  ;;  %v1394_v55 = vld [vmem:[#allocation2 + $0x24] sm:$0x3] }
  0xe0   :  { %v3074_v52 = vrot.slane %v3072_v11, 5  ;;  %v3081_v6 = vshrl.u32 %v3012_v33, 16  ;;  %v3084_v19 = vshll.u32 %v3012_v33, 16  ;;  %v1400_v31 = vshrl.u32 %v4650_v21, 16 }
  0xe1   :  { %3686 = vmatmul.mubr.msk.bf16.gmra.mrb[4].mxu1 %vm219_vm2, %v3395_v3  ;;  %v3052_v54 = vsel %vm4445_vm9, %v3043_v42, %v3051_v8  ;;  %v3061_v16 = vrot.slane %v3060_v46, 4  ;;  %v3069_v32 = vor.u32 %v3068_v30, %v3065_v44  ;;  %v3077_v62 = vrot.slane %v3075_v60, 6 }
  0xe2   :  { %v3498_v59 = vcombine.low %v3034_v20, %v3052_v54  ;;  %v3083_v23 = vrot.slane %v3081_v6, 5  ;;  %v3086_v43 = vrot.slane %v3084_v19, 6  ;;  %v1402_v50 = vrot.slane %v1400_v31, 5  ;;  %v3013_v19 = vld [vmem:[#allocation2 + $0x3c] sm:$0x3] }
  0xe3   :  { %v3070_v56 = vsel %vm4445_vm9, %v3061_v16, %v3069_v32  ;;  %v3078_v27 = vor.u32 %v3077_v62, %v3074_v52  ;;  %v1403_v36 = vshll.u32 %v4650_v21, 16  ;;  %v1409_v63 = vshrl.u32 %v1391_v47, 16 }
  0xe4   :  { %3789 = vmatprep.mubr.msk.bf16.mxu0 %vm219_vm2, %v3498_v59  ;;  %v3087_v38 = vor.u32 %v3086_v43, %v3083_v23  ;;  %v1412_v26 = vshll.u32 %v1391_v47, 16  ;;  %v1418_v17 = vshrl.u32 %v4660_v7, 16  ;;  %v1421_v3 = vshll.u32 %v4660_v7, 16 }
  0xe5   :  { %v3079_v18 = vrot.slane %v3078_v27, 4  ;;  %v1405_v57 = vrot.slane %v1403_v36, 6  ;;  %v1411_v48 = vrot.slane %v1409_v63, 5  ;;  %v1427_v10 = vshrl.u32 %v1392_v45, 16 }
  0xe6   :  { %v1414_v0 = vrot.slane %v1412_v26, 6  ;;  %v1420_v29 = vrot.slane %v1418_v17, 5  ;;  %v1423_v39 = vrot.slane %v1421_v3, 6  ;;  %v1430_v25 = vshll.u32 %v1392_v45, 16 }
  0xe7   :  { %v3088_v21 = vsel %vm4445_vm9, %v3079_v18, %v3087_v38  ;;  %v1406_v58 = vor.u32 %v1405_v57, %v1402_v50  ;;  %v1429_v22 = vrot.slane %v1427_v10, 5  ;;  %v1436_v61 = vshrl.u32 %v4664_v34, 16 }
  0xe8   :  { %v3499_v51 = vcombine.low %v3070_v56, %v3088_v21  ;;  %v1415_v13 = vor.u32 %v1414_v0, %v1411_v48  ;;  %v1424_v28 = vor.u32 %v1423_v39, %v1420_v29  ;;  %v1432_v7 = vrot.slane %v1430_v25, 6  ;;  %v3014_v56 = vld [vmem:[#allocation2 + $0x44] sm:$0x3]  ;;  %v3015_v25 = vld [vmem:[#allocation2 + $0x4c] sm:$0x3] }
  0xe9   :  { %v1407_v41 = vrot.slane %v1406_v58, 4  ;;  %v1438_v33 = vrot.slane %v1436_v61, 5  ;;  %v1439_v53 = vshll.u32 %v4664_v34, 16  ;;  %v1445_v35 = vshrl.u32 %v1393_v5, 16 }
  0xea   :  { %3790 = vmatmul.mubr.msk.bf16.vlgmr.msra.gmra.mrb[0].mxu0 %vm219_vm2, %v3499_v51  ;;  %v1425_v2 = vrot.slane %v1424_v28, 4  ;;  %v1433_v20 = vor.u32 %v1432_v7, %v1429_v22  ;;  %v1448_v8 = vshll.u32 %v1393_v5, 16  ;;  %v1454_v44 = vshrl.u32 %v4666_v9, 16  ;;  %v3016_v28 = vld [vmem:[#allocation2 + $0x54] sm:$0x3] }
  0xeb   :  { %v1416_v11 = vsel %vm4445_vm9, %v1407_v41, %v1415_v13  ;;  %v1441_v42 = vrot.slane %v1439_v53, 6  ;;  %v1447_v46 = vrot.slane %v1445_v35, 5  ;;  %v1457_v30 = vshll.u32 %v4666_v9, 16 }
  0xec   :  { %v1434_v60 = vsel %vm4445_vm9, %v1425_v2, %v1433_v20  ;;  %v1450_v52 = vrot.slane %v1448_v8, 6  ;;  %v1456_v34 = vrot.slane %v1454_v44, 5  ;;  %v1463_v6 = vshrl.u32 %v1394_v55, 16 }
  0xed   :  { %v3402_v47 = vcombine.low %v1416_v11, %v1434_v60  ;;  %v1442_v31 = vor.u32 %v1441_v42, %v1438_v33  ;;  %v1459_v54 = vrot.slane %v1457_v30, 6  ;;  %v1466_v16 = vshll.u32 %v1394_v55, 16 }
  0xee   :  { %v1451_v32 = vor.u32 %v1450_v52, %v1447_v46  ;;  %v1465_v62 = vrot.slane %v1463_v6, 5  ;;  %v3090_v59 = vshrl.u32 %v4678_v14, 16  ;;  %v3093_v23 = vshll.u32 %v4678_v14, 16 }
  0xef   :  { %3693 = vmatprep.mubr.msk.bf16.mxu1 %vm219_vm2, %v3402_v47  ;;  %v1443_v9 = vrot.slane %v1442_v31, 4  ;;  %v1460_v43 = vor.u32 %v1459_v54, %v1456_v34  ;;  %v1468_v45 = vrot.slane %v1466_v16, 6  ;;  %v3099_v50 = vshrl.u32 %v3013_v19, 16  ;;  %v1395_v34 = vld [vmem:[#allocation2 + $0x2c] sm:$0x3] }
  0xf0   :  { %v3092_v27 = vrot.slane %v3090_v59, 5  ;;  %v3095_v36 = vrot.slane %v3093_v23, 6  ;;  %v3102_v63 = vshll.u32 %v3013_v19, 16  ;;  %v3108_v38 = vshrl.u32 %v4685_v37, 16 }
  0xf1   :  { %v1452_v26 = vsel %vm4445_vm9, %v1443_v9, %v1451_v32  ;;  %v1461_v17 = vrot.slane %v1460_v43, 4  ;;  %v1469_v3 = vor.u32 %v1468_v45, %v1465_v62  ;;  %v3101_v18 = vrot.slane %v3099_v50, 5  ;;  %v1396_v62 = vld [vmem:[#allocation2 + $0x34] sm:$0x3] }
  0xf2   :  { %v3096_v57 = vor.u32 %v3095_v36, %v3092_v27  ;;  %v3104_v14 = vrot.slane %v3102_v63, 6  ;;  %v3110_v48 = vrot.slane %v3108_v38, 5  ;;  %v3111_v10 = vshll.u32 %v4685_v37, 16 }
  0xf3   :  { %v1470_v0 = vsel %vm4445_vm9, %v1461_v17, %v1469_v3  ;;  %v3117_v29 = vshrl.u32 %v3014_v56, 16  ;;  %v3120_v39 = vshll.u32 %v3014_v56, 16  ;;  %v3126_v5 = vshrl.u32 %v4693_v24, 16 }
  0xf4   :  { %v3403_v21 = vcombine.low %v1452_v26, %v1470_v0  ;;  %v3097_v58 = vrot.slane %v3096_v57, 4  ;;  %v3105_v22 = vor.u32 %v3104_v14, %v3101_v18  ;;  %v3113_v61 = vrot.slane %v3111_v10, 6  ;;  %v1397_v57 = vld [vmem:[#allocation2 + $0x3c] sm:$0x3] }
  0xf5   :  { %v3119_v51 = vrot.slane %v3117_v29, 5  ;;  %v3122_v13 = vrot.slane %v3120_v39, 6  ;;  %v3128_v7 = vrot.slane %v3126_v5, 5  ;;  %v3129_v41 = vshll.u32 %v4693_v24, 16 }
  0xf6   :  { %3694 = vmatmul.mubr.msk.bf16.vlgmr.msra.gmra.mrb[0].mxu1 %vm219_vm2, %v3403_v21  ;;  %v3106_v37 = vsel %vm4445_vm9, %v3097_v58, %v3105_v22  ;;  %v3114_v55 = vor.u32 %v3113_v61, %v3110_v48  ;;  %v3135_v33 = vshrl.u32 %v3015_v25, 16  ;;  %v3138_v53 = vshll.u32 %v3015_v25, 16  ;;  %v1398_v58 = vld [vmem:[#allocation2 + $0x44] sm:$0x3] }
  0xf7   :  { %v3123_v35 = vor.u32 %v3122_v13, %v3119_v51  ;;  %v3131_v2 = vrot.slane %v3129_v41, 6  ;;  %v3144_v20 = vshrl.u32 %v4695_v1, 16  ;;  %v3147_v8 = vshll.u32 %v4695_v1, 16 }
  0xf8   :  { %v3115_v44 = vrot.slane %v3114_v55, 4  ;;  %v3137_v11 = vrot.slane %v3135_v33, 5  ;;  %v3140_v42 = vrot.slane %v3138_v53, 6  ;;  %v3153_v46 = vshrl.u32 %v3016_v28, 16 }
  0xf9   :  { %v3132_v30 = vor.u32 %v3131_v2, %v3128_v7  ;;  %v3146_v24 = vrot.slane %v3144_v20, 5  ;;  %v3149_v60 = vrot.slane %v3147_v8, 6  ;;  %v3156_v52 = vshll.u32 %v3016_v28, 16 }
  0xfa   :  { %v3124_v6 = vsel %vm4445_vm9, %v3115_v44, %v3123_v35  ;;  %v3141_v19 = vor.u32 %v3140_v42, %v3137_v11  ;;  %v3155_v47 = vrot.slane %v3153_v46, 5  ;;  %v1472_v31 = vshrl.u32 %v4700_v12, 16 }
  0xfb   :  { %v3500_v54 = vcombine.low %v3106_v37, %v3124_v6  ;;  %v3133_v16 = vrot.slane %v3132_v30, 4  ;;  %v3150_v32 = vor.u32 %v3149_v60, %v3146_v24  ;;  %v3158_v1 = vrot.slane %v3156_v52, 6 }
  0xfc   :  { %v1474_v59 = vrot.slane %v1472_v31, 5  ;;  %v1475_v23 = vshll.u32 %v4700_v12, 16  ;;  %v1481_v9 = vshrl.u32 %v1395_v34, 16  ;;  %v1484_v43 = vshll.u32 %v1395_v34, 16 }
  0xfd   :  { %3793 = vmatprep.mubr.msk.bf16.mxu0 %vm219_vm2, %v3500_v54  ;;  %v3142_v45 = vsel %vm4445_vm9, %v3133_v16, %v3141_v19  ;;  %v3151_v50 = vrot.slane %v3150_v32, 4  ;;  %v3159_v56 = vor.u32 %v3158_v1, %v3155_v47  ;;  %v1490_v27 = vshrl.u32 %v4707_v4, 16  ;;  %v3508_v1 = vld [vmem:[#allocation7] ss:$0 sm:$0xff] }
  0xfe   :  { %v1477_v36 = vrot.slane %v1475_v23, 6  ;;  %v1483_v63 = vrot.slane %v1481_v9, 5  ;;  %v1486_v38 = vrot.slane %v1484_v43, 6  ;;  %v1493_v26 = vshll.u32 %v4707_v4, 16 }
  0xff   :  { %v3160_v17 = vsel %vm4445_vm9, %v3151_v50, %v3159_v56  ;;  %v1492_v12 = vrot.slane %v1490_v27, 5  ;;  %v1499_v3 = vshrl.u32 %v1396_v62, 16  ;;  %v1502_v18 = vshll.u32 %v1396_v62, 16 }
 0x100   :  { %v3501_v14 = vcombine.low %v3142_v45, %v3160_v17  ;;  %v1478_v48 = vor.u32 %v1477_v36, %v1474_v59  ;;  %v1487_v10 = vor.u32 %v1486_v38, %v1483_v63  ;;  %v1495_v0 = vrot.slane %v1493_v26, 6 }
 0x101   :  { %v1501_v29 = vrot.slane %v1499_v3, 5  ;;  %v1504_v39 = vrot.slane %v1502_v18, 6  ;;  %v1508_v25 = vshrl.u32 %v4716_v49, 16  ;;  %v1511_v5 = vshll.u32 %v4716_v49, 16 }
 0x102   :  { %3794 = vmatmul.mubr.msk.bf16.gmra.mrb[4].mxu0 %vm219_vm2, %v3501_v14  ;;  %v1479_v4 = vrot.slane %v1478_v48, 4  ;;  %v1496_v21 = vor.u32 %v1495_v0, %v1492_v12  ;;  %v1517_v22 = vshrl.u32 %v1397_v57, 16  ;;  %v1520_v61 = vshll.u32 %v1397_v57, 16 }
 0x103   :  { %v1505_v51 = vor.u32 %v1504_v39, %v1501_v29  ;;  %v1510_v13 = vrot.slane %v1508_v25, 5  ;;  %v1513_v28 = vrot.slane %v1511_v5, 6  ;;  %v1526_v7 = vshrl.u32 %v4724_v15, 16 }
 0x104   :  { %v1488_v41 = vsel %vm4445_vm9, %v1479_v4, %v1487_v10  ;;  %v1497_v37 = vrot.slane %v1496_v21, 4  ;;  %v1519_v55 = vrot.slane %v1517_v22, 5  ;;  %v1522_v33 = vrot.slane %v1520_v61, 6 }
 0x105   :  { %v1514_v53 = vor.u32 %v1513_v28, %v1510_v13  ;;  %v1528_v49 = vrot.slane %v1526_v7, 5  ;;  %v1529_v35 = vshll.u32 %v4724_v15, 16  ;;  %v1535_v2 = vshrl.u32 %v1398_v58, 16 }
 0x106   :  { %v1506_v20 = vsel %vm4445_vm9, %v1497_v37, %v1505_v51  ;;  %v1523_v8 = vor.u32 %v1522_v33, %v1519_v55  ;;  %v1538_v44 = vshll.u32 %v1398_v58, 16 }
 0x107   :  { %v3404_v11 = vcombine.low %v1488_v41, %v1506_v20  ;;  %v1515_v42 = vrot.slane %v1514_v53, 4  ;;  %v1531_v46 = vrot.slane %v1529_v35, 6  ;;  %v1537_v30 = vrot.slane %v1535_v2, 5 }
 0x108   :  { %v1540_v24 = vrot.slane %v1538_v44, 6 }
 0x109   :  { %3697 = vmatprep.mubr.msk.bf16.mxu1 %vm219_vm2, %v3404_v11  ;;  %v1532_v60 = vor.u32 %v1531_v46, %v1528_v49  ;;  %v1524_v34 = vsel %vm4445_vm9, %v1515_v42, %v1523_v8 }
 0x10a   :  { %v1541_v52 = vor.u32 %v1540_v24, %v1537_v30 }
 0x10b   :  { %v1533_v6 = vrot.slane %v1532_v60, 4 }
 0x10d   :  { %v1542_v15 = vsel %vm4445_vm9, %v1533_v6, %v1541_v52 }
 0x10e   :  { %v3405_v19 = vcombine.low %v1524_v34, %v1542_v15 }
 0x110   :  { %3698 = vmatmul.mubr.msk.bf16.gmra.mrb[4].mxu1 %vm219_vm2, %v3405_v19 }
 0x1bd   :  { %v3791_v47 = vpop.f32.mrb[0].mxu0 }
 0x1be   :  { %v3236_v31 = vpop.f32.mrb[1].mxu0 }
 0x1bf   :  { %v3792_v54 = vpop.f32.mrb[2].mxu0 }
 0x1c0   :  { %v3239_v16 = vpop.f32.mrb[3].mxu0 }
 0x1c9   :  { %v3695_v32 = vpop.f32.mrb[0].mxu1 }
 0x1ca   :  { %v3797_v62 = vadd.f32 %v3791_v47, %v3695_v32  ;;  %v1618_v59 = vpop.f32.mrb[1].mxu1 }
 0x1cb   :  { %v3798_v23 = vadd.f32 %v3236_v31, %v1618_v59  ;;  %v3696_v9 = vpop.f32.mrb[2].mxu1 }
 0x1cc   :  { %v3284_v43 = vadd.f32 %v3797_v62, %v3508_v1  ;;  %v3799_v45 = vadd.f32 %v3792_v54, %v3696_v9  ;;  %v1621_v50 = vpop.f32.mrb[3].mxu1 }
 0x1cd   :  { %v3282_v56 = vadd.f32 %v3798_v23, %v3508_v1  ;;  %v3800_v27 = vadd.f32 %v3239_v16, %v1621_v50 }
 0x1ce   :  { %3292 = vst [vmem:[#allocation8 + $0x10] sm:$0xff] %v3284_v43  ;;  %v3285_v40 = vadd.f32 %v3799_v45, %v3508_v1 }
 0x1cf   :  { %3290 = vst [vmem:[#allocation8] sm:$0xff] %v3282_v56  ;;  %v3283_v36 = vadd.f32 %v3800_v27, %v3508_v1 }
 0x1d0   :  { %3293 = vst [vmem:[#allocation8 + $0x18] sm:$0xff] %v3285_v40 }
 0x1d1   :  { %3291 = vst [vmem:[#allocation8 + $0x8] sm:$0xff] %v3283_v36 }
 0x1d5   :  { %v3795_v63 = vpop.f32.mrb[4].mxu0 }
 0x1d6   :  { %v3252_v38 = vpop.f32.mrb[5].mxu0 }
 0x1d7   :  { %v3796_v26 = vpop.f32.mrb[6].mxu0 }
 0x1d8   :  { %v3255_v17 = vpop.f32.mrb[7].mxu0 }
 0x1e3   :  { %v3699_v12 = vpop.f32.mrb[4].mxu1 }
 0x1e4   :  { %v3801_v3 = vadd.f32 %v3795_v63, %v3699_v12  ;;  %v1634_v18 = vpop.f32.mrb[5].mxu1 }
 0x1e5   :  { %v3802_v57 = vadd.f32 %v3252_v38, %v1634_v18  ;;  %v3700_v14 = vpop.f32.mrb[6].mxu1 }
 0x1e6   :  { %v3288_v48 = vadd.f32 %v3801_v3, %v3508_v1  ;;  %v3803_v10 = vadd.f32 %v3796_v26, %v3700_v14  ;;  %v1637_v0 = vpop.f32.mrb[7].mxu1 }
 0x1e7   :  { %v3286_v29 = vadd.f32 %v3802_v57, %v3508_v1  ;;  %v3804_v39 = vadd.f32 %v3255_v17, %v1637_v0 }
 0x1e8   :  { %3296 = vst [vmem:[#allocation8 + $0x30] sm:$0xff] %v3288_v48  ;;  %v3289_v25 = vadd.f32 %v3803_v10, %v3508_v1 }
 0x1e9   :  { %3294 = vst [vmem:[#allocation8 + $0x20] sm:$0xff] %v3286_v29  ;;  %v3287_v5 = vadd.f32 %v3804_v39, %v3508_v1 }
 0x1ea   :  { %3297 = vst [vmem:[#allocation8 + $0x38] sm:$0xff] %v3289_v25 }
 0x1eb   :  { %3295 = vst [vmem:[#allocation8 + $0x28] sm:$0xff] %v3287_v5 }
 0x1ec   :  { %4050 = shalt.err (!%p4047_p0)
}
 0x1ed   :  { %s4051_s26 = scalar_lea.hbm %s4839_s3, 1024 }
 0x1ee   :  { %p4052_p1 = scmp.ne.s32.totalorder %s4839_s3, %s4051_s26  ;;  %p4055_p2 = scmp.lt.u32.totalorder %s4051_s26, %s4839_s3 }
 0x1f0   :  { %p4057_p3 = pnand %p4055_p2, %p4052_p1 }
 0x1f2   :  { %4060 = shalt.err (!%p4057_p3)
}
 0x1f3   :  { %s4073_s4 = smov 128   ;;  %s4074_s5 = smov 8  }
 0x1f4   :  { %3309 = dma.vmem_to_hbm [thread:$0]  %s3304_s22, 1024, %s4839_s3, [#allocation4], %s4073_s4, %s4073_s4, %s4074_s5  }
 0x1f5   :  { %4065 = dma.done.wait [#allocation4], 1024  }
 0x1f6   :  { %4066 = vsyncadd [#allocation4], 4294966272 }
 0x1f7   :  { %3313 = vsyncpa [#allocation3], 1 }
 0x1f8   :  { %3314 = vsyncpa [#allocation6], 1 }
 0x1f9   :  { %3315 = vsyncpa [#allocation4], 1 }

</bundles_post_ra>
